<compile_context>
chip_gen: v6e
topology: v6e:2x2x1
jax: 0.10.0
libtpu: 0.0.40
codegen_flags: <defaults>
</compile_context>

<pallas_src>
import functools

import jax
import jax.numpy as jnp
from jax.experimental import pallas as pl
from jax.experimental.pallas import tpu as pltpu


def _fused_block_kernel(x_ref, w1_ref, w2_ref, pvec_ref, o_ref,
                        col1_ref, col2_ref, act_ref, *, H, W, G, eps):
    """B samples per grid step: (conv3x3 + ReLU + GroupNorm) x 2, fully fused.

    Layout: spatial positions are flattened with row stride Wp = W+2, so the
    3x3 tap (dy, dx) of the zero-padded image is the flat slice starting at
    dy*Wp + dx.  The 2 extra columns per row (and the width-padding columns
    l >= H*Wp) are "garbage" lanes: masked out of the GroupNorm statistics,
    zeroed before being reused as conv-2 padding, and stripped by the wrapper.

    x_ref    : (B, C_in, Lpx)      padded inputs, flattened
    w1_ref   : (C_out, 9*C_in)     conv1 weight, K index = (dy*3+dx)*C_in + c
    w2_ref   : (C_out, 9*C_out)    conv2 weight
    pvec_ref : (C_out, 6)          [b1, g1, be1, b2, g2, be2] packed per channel
    o_ref    : (B, C_out, LW)      output (LW = round_up(H*Wp, 128))
    col1_ref : (9*C_in, LW)        VMEM scratch: conv1 im2col
    col2_ref : (9*C_out, LW)       VMEM scratch: conv2 im2col
    act_ref  : (C_out, Lpx)        VMEM scratch: zero-padded conv1 activation
    """
    B, C_in, Lpx = x_ref.shape
    C_out = o_ref.shape[1]
    LW = o_ref.shape[2]
    Wp = W + 2
    L = H * Wp                       # real flat conv-output length
    cg = C_out // G
    inv_count = 1.0 / float(cg * H * W)
    taps = [(dy, dx) for dy in range(3) for dx in range(3)]

    # ----- hoisted per-step constants (one packed DMA, iota-built masks) -----
    pv = pvec_ref[...]                                        # (C_out, 6)
    b1, g1, be1 = pv[:, 0:1], pv[:, 1:2], pv[:, 2:3]
    b2, g2, be2 = pv[:, 3:4], pv[:, 4:5], pv[:, 5:6]
    w1 = w1_ref[...]                                          # (C_out, 9*C_in)
    w2 = w2_ref[...]                                          # (C_out, 9*C_out)

    # valid-column mask: l < L and (l mod Wp) < W, via f32 index math only
    colf = jax.lax.broadcasted_iota(jnp.int32, (1, LW), 1).astype(jnp.float32)
    rowf = jnp.floor(colf / float(Wp))
    valid = jnp.logical_and((colf - rowf * float(Wp)) < float(W),
                            colf < float(L))                  # (1, LW) bool
    chf = jax.lax.broadcasted_iota(jnp.int32, (C_out, 1), 0).astype(jnp.float32)

    # Zero only the act borders once per step: the interior [Wp+1, Wp+1+L)
    # is fully overwritten for every sample; everything outside it must stay 0
    # so conv2's out-of-range taps (and width-pad columns) read zeros.
    act_ref[:, :Wp + 1] = jnp.zeros((C_out, Wp + 1), jnp.float32)
    act_ref[:, Wp + 1 + L:Lpx] = jnp.zeros((C_out, Lpx - (Wp + 1 + L)), jnp.float32)

    def group_norm(y, gamma, beta):
        # y: (C_out, LW); stats over valid columns, per (sample, group).
        ym = jnp.where(valid, y, 0.0)
        stacked = jnp.concatenate([ym, ym * ym], axis=0)      # (2*C_out, LW)
        cs = jnp.sum(stacked, axis=1, keepdims=True)          # one lane reduction
        mean = jnp.zeros((C_out, 1), jnp.float32)
        ex2 = jnp.zeros((C_out, 1), jnp.float32)
        for g in range(G):
            lo, hi = g * cg, (g + 1) * cg
            s_g = jnp.sum(cs[lo:hi], axis=0, keepdims=True)                # (1,1)
            q_g = jnp.sum(cs[C_out + lo:C_out + hi], axis=0, keepdims=True)
            in_g = jnp.logical_and(chf >= float(lo), chf < float(hi))      # (C_out,1)
            mean = jnp.where(in_g, s_g * inv_count, mean)
            ex2 = jnp.where(in_g, q_g * inv_count, ex2)
        var = jnp.maximum(ex2 - mean * mean, 0.0)   # clamp E[x^2]-E[x]^2 >= 0
        scale = jax.lax.rsqrt(var + eps) * gamma
        return (y - mean) * scale + beta            # full (C_out, LW) result

    # -------- per-sample work (unrolled; amortizes per-step overhead) --------
    for b in range(B):
        x_b = x_ref[b]                                        # (C_in, Lpx)

        # conv1 as ONE K-stacked matmul: gather shifted slices into im2col
        for t, (dy, dx) in enumerate(taps):
            off = dy * Wp + dx
            col1_ref[t * C_in:(t + 1) * C_in, :] = x_b[:, off:off + LW]
        y1 = jnp.dot(w1, col1_ref[...], preferred_element_type=jnp.float32) + b1
        y1 = jnp.maximum(y1, 0.0)
        yn1 = group_norm(y1, g1, be1)

        # zero-padded conv2 input (mask keeps aliased padding columns at 0)
        yn1m = jnp.where(valid, yn1, 0.0)
        act_ref[:, Wp + 1:Wp + 1 + L] = yn1m[:, :L]

        # conv2 as ONE K-stacked matmul over the padded activation
        a_p = act_ref[...]                                    # (C_out, Lpx)
        for t, (dy, dx) in enumerate(taps):
            off = dy * Wp + dx
            col2_ref[t * C_out:(t + 1) * C_out, :] = a_p[:, off:off + LW]
        y2 = jnp.dot(w2, col2_ref[...], preferred_element_type=jnp.float32) + b2
        y2 = jnp.maximum(y2, 0.0)
        yn2 = group_norm(y2, g2, be2)

        o_ref[b] = yn2.astype(o_ref.dtype)                    # full lane-dense store


def unet_conv_block(x, params, num_groups, padding=1, eps=1e-5, batch_block=None):
    """Forward pass of UNetConvBlock (norm='group'), single fused Pallas call."""
    assert padding == 1, "fused kernel implements the padding=True ('same') config"
    N, C_in, H, W = x.shape
    C_out = params["w1"].shape[0]
    Hp, Wp = H + 2, W + 2
    L = H * Wp                                   # per-sample flat conv-output length
    LW = ((L + 127) // 128) * 128                # lane-dense width (multiple of 128)
    Lpx = 2 * Wp + 2 + LW                        # padded flat input length (all taps fit)

    if batch_block is None:
        # Largest divisor of N that is <= 8: amortizes the per-step pipeline
        # overhead and per-step DMA setup.  (On v7x with large N prefer ~N/2
        # per step so the 'parallel' grid axis still feeds both TensorCores.)
        batch_block = max(b for b in range(1, min(N, 8) + 1) if N % b == 0)
    B = batch_block
    assert N % B == 0, "batch_block must divide N"

    # zero-pad spatially, flatten rows with stride Wp, pad the flat axis to Lpx
    x_pad = jnp.pad(x, ((0, 0), (0, 0), (1, 1), (1, 1))).reshape(N, C_in, Hp * Wp)
    x_pad = jnp.pad(x_pad, ((0, 0), (0, 0), (0, Lpx - Hp * Wp))).astype(jnp.float32)

    def kmat(w):   # (C_out, C_in, 3, 3) -> (C_out, 9*C_in), K = (dy*3+dx)*C_in + c
        co, ci = w.shape[0], w.shape[1]
        return w.transpose(0, 2, 3, 1).reshape(co, 9 * ci).astype(jnp.float32)

    # pack the six per-channel vectors into ONE (C_out, 6) input (one DMA)
    pvec = jnp.stack([params["b1"], params["g1"], params["be1"],
                      params["b2"], params["g2"], params["be2"]],
                     axis=1).astype(jnp.float32)

    kernel = functools.partial(_fused_block_kernel, H=H, W=W, G=num_groups, eps=eps)

    out_flat = pl.pallas_call(
        kernel,
        out_shape=jax.ShapeDtypeStruct((N, C_out, LW), jnp.float32),
        grid_spec=pltpu.PrefetchScalarGridSpec(
            num_scalar_prefetch=0,
            grid=(N // B,),
            in_specs=[
                pl.BlockSpec((B, C_in, Lpx), lambda n: (n, 0, 0)),
                pl.BlockSpec((C_out, 9 * C_in), lambda n: (0, 0)),
                pl.BlockSpec((C_out, 9 * C_out), lambda n: (0, 0)),
                pl.BlockSpec((C_out, 6), lambda n: (0, 0)),
            ],
            out_specs=pl.BlockSpec((B, C_out, LW), lambda n: (n, 0, 0)),
            scratch_shapes=[
                pltpu.VMEM((9 * C_in, LW), jnp.float32),    # conv1 im2col (K=9*C_in)
                pltpu.VMEM((9 * C_out, LW), jnp.float32),   # conv2 im2col (K=9*C_out)
                pltpu.VMEM((C_out, Lpx), jnp.float32),      # zero-padded conv1 activation
            ],
        ),
        compiler_params=pltpu.CompilerParams(dimension_semantics=("parallel",)),
    )(x_pad, kmat(params["w1"]), kmat(params["w2"]), pvec)

    # (N, C_out, LW) -> (N, C_out, H, W): drop width-pad cols, then 2 garbage cols/row.
    # (Keep this wrapper reshape only because the module contract is NCHW output.)
    return out_flat[:, :, :L].reshape(N, C_out, H, Wp)[:, :, :, :W]


# ---------------- reference (plain JAX) for verification ----------------
def _ref_conv(x, w, b, padding):
    y = jax.lax.conv_general_dilated(
        x, w, window_strides=(1, 1),
        padding=((padding, padding), (padding, padding)),
        dimension_numbers=("NCHW", "OIHW", "NCHW"))
    return y + b[None, :, None, None]


def _ref_groupnorm(x, gamma, beta, G, eps=1e-5):
    N, C, H, W = x.shape
    xg = x.reshape(N, G, (C // G) * H * W)
    mean = xg.mean(-1, keepdims=True)
    var = ((xg - mean) ** 2).mean(-1, keepdims=True)
    xg = (xg - mean) / jnp.sqrt(var + eps)
    x = xg.reshape(N, C, H, W)
    return x * gamma[None, :, None, None] + beta[None, :, None, None]


def _ref_block(x, p, G, padding):
    h = jnp.maximum(_ref_conv(x, p["w1"], p["b1"], padding), 0.0)
    h = _ref_groupnorm(h, p["g1"], p["be1"], G)
    h = jnp.maximum(_ref_conv(h, p["w2"], p["b2"], padding), 0.0)
    h = _ref_groupnorm(h, p["g2"], p["be2"], G)
    return h


if __name__ == "__main__":
    # Module config
    in_size, out_size = 4, 8
    num_groups = 2          # norm_param for norm='group'
    padding = 1             # padding=True
    N, H, W = 2, 16, 16

    key = jax.random.PRNGKey(0)
    keys = jax.random.split(key, 8)
    x = jax.random.normal(keys[0], (N, in_size, H, W), jnp.float32)

    # Deterministic synthetic parameters (shapes per nn.Conv2d / nn.GroupNorm)
    params = {
        "w1": 0.1 * jax.random.normal(keys[1], (out_size, in_size, 3, 3), jnp.float32),
        "b1": 0.1 * jax.random.normal(keys[2], (out_size,), jnp.float32),
        "g1": 1.0 + 0.1 * jax.random.normal(keys[3], (out_size,), jnp.float32),
        "be1": 0.1 * jax.random.normal(keys[4], (out_size,), jnp.float32),
        "w2": 0.1 * jax.random.normal(keys[5], (out_size, out_size, 3, 3), jnp.float32),
        "b2": 0.1 * jax.random.normal(keys[6], (out_size,), jnp.float32),
        "g2": 1.0 + 0.1 * jax.random.normal(keys[7], (out_size,), jnp.float32),
        "be2": jnp.zeros((out_size,), jnp.float32),
    }

    out = jax.block_until_ready(unet_conv_block(x, params, num_groups, padding))
    ref = jax.block_until_ready(_ref_block(x, params, num_groups, padding))

    assert out.shape == (N, out_size, H, W), out.shape
    assert jnp.allclose(out, ref, rtol=1e-3, atol=1e-3), \
        f"max abs err {jnp.max(jnp.abs(out - ref))}"

    print("KERNEL_OK")
</pallas_src>

<mosaic_0001>
module attributes {stable_mosaic.version = 11 : i64} {
  func.func @_fused_block_kernel(%arg0: i32, %arg1: memref<2x4x422xf32, #tpu.memory_space<vmem>>, %arg2: memref<8x36xf32, #tpu.memory_space<vmem>>, %arg3: memref<8x72xf32, #tpu.memory_space<vmem>>, %arg4: memref<8x6xf32, #tpu.memory_space<vmem>>, %arg5: memref<2x8x384xf32, #tpu.memory_space<vmem>>, %arg6: memref<36x384xf32, #tpu.memory_space<vmem>>, %arg7: memref<72x384xf32, #tpu.memory_space<vmem>>, %arg8: memref<8x422xf32, #tpu.memory_space<vmem>>) attributes {dimension_semantics = [#tpu.dimension_semantics<parallel>], iteration_bounds = array<i64: 1>, scalar_prefetch = 0 : i64, scratch_operands = 3 : i64, tpu.core_type = #tpu.core_type<tc>, window_params = [{transform_indices = @transform_0, window_bounds = array<i64: 2, 4, 422>}, {pipeline_mode = #tpu.pipeline_mode<synchronous>, transform_indices = @transform_1, window_bounds = array<i64: 8, 36>}, {pipeline_mode = #tpu.pipeline_mode<synchronous>, transform_indices = @transform_2, window_bounds = array<i64: 8, 72>}, {pipeline_mode = #tpu.pipeline_mode<synchronous>, transform_indices = @transform_3, window_bounds = array<i64: 8, 6>}, {transform_indices = @transform_4, window_bounds = array<i64: 2, 8, 384>}]} {
    %c0 = arith.constant 0 : index
    %c0_0 = arith.constant 0 : index
    %0 = vector.load %arg4[%c0, %c0_0] : memref<8x6xf32, #tpu.memory_space<vmem>>, vector<8x6xf32>
    %1 = vector.extract_strided_slice %0 {offsets = [0, 0], sizes = [8, 1], strides = [1, 1]} : vector<8x6xf32> to vector<8x1xf32>
    %2 = vector.extract_strided_slice %0 {offsets = [0, 1], sizes = [8, 1], strides = [1, 1]} : vector<8x6xf32> to vector<8x1xf32>
    %3 = vector.extract_strided_slice %0 {offsets = [0, 2], sizes = [8, 1], strides = [1, 1]} : vector<8x6xf32> to vector<8x1xf32>
    %4 = vector.extract_strided_slice %0 {offsets = [0, 3], sizes = [8, 1], strides = [1, 1]} : vector<8x6xf32> to vector<8x1xf32>
    %5 = vector.extract_strided_slice %0 {offsets = [0, 4], sizes = [8, 1], strides = [1, 1]} : vector<8x6xf32> to vector<8x1xf32>
    %6 = vector.extract_strided_slice %0 {offsets = [0, 5], sizes = [8, 1], strides = [1, 1]} : vector<8x6xf32> to vector<8x1xf32>
    %c0_1 = arith.constant 0 : index
    %c0_2 = arith.constant 0 : index
    %7 = vector.load %arg2[%c0_1, %c0_2] : memref<8x36xf32, #tpu.memory_space<vmem>>, vector<8x36xf32>
    %c0_3 = arith.constant 0 : index
    %c0_4 = arith.constant 0 : index
    %8 = vector.load %arg3[%c0_3, %c0_4] : memref<8x72xf32, #tpu.memory_space<vmem>>, vector<8x72xf32>
    %9 = tpu.iota {dimensions = array<i32: 1>} : vector<1x384xi32>
    %10 = arith.sitofp %9 : vector<1x384xi32> to vector<1x384xf32>
    %cst = arith.constant 1.800000e+01 : f32
    %11 = vector.broadcast %cst : f32 to vector<1x384xf32>
    %12 = arith.divf %10, %11 : vector<1x384xf32>
    %13 = math.floor %12 : vector<1x384xf32>
    %cst_5 = arith.constant 1.800000e+01 : f32
    %14 = vector.broadcast %cst_5 : f32 to vector<1x384xf32>
    %15 = arith.mulf %13, %14 : vector<1x384xf32>
    %16 = arith.subf %10, %15 : vector<1x384xf32>
    %cst_6 = arith.constant 1.600000e+01 : f32
    %17 = vector.broadcast %cst_6 : f32 to vector<1x384xf32>
    %18 = arith.cmpf olt, %16, %17 : vector<1x384xf32>
    %cst_7 = arith.constant 2.880000e+02 : f32
    %19 = vector.broadcast %cst_7 : f32 to vector<1x384xf32>
    %20 = arith.cmpf olt, %10, %19 : vector<1x384xf32>
    %21 = arith.andi %18, %20 : vector<1x384xi1>
    %22 = tpu.iota {dimensions = array<i32: 0>} : vector<8x1xi32>
    %23 = arith.sitofp %22 : vector<8x1xi32> to vector<8x1xf32>
    %cst_8 = arith.constant 0.000000e+00 : f32
    %24 = vector.broadcast %cst_8 : f32 to vector<8x19xf32>
    %c0_9 = arith.constant 0 : index
    %c0_10 = arith.constant 0 : index
    %25 = vector.load %arg8[%c0_9, %c0_10] : memref<8x422xf32, #tpu.memory_space<vmem>>, vector<8x19xf32>
    tpu.vector_store %arg8[%c0_9, %c0_10], %24 {strides = array<i32>} : memref<8x422xf32, #tpu.memory_space<vmem>>, vector<8x19xf32>,
    %cst_11 = arith.constant 0.000000e+00 : f32
    %26 = vector.broadcast %cst_11 : f32 to vector<8x115xf32>
    %c0_12 = arith.constant 0 : index
    %c307 = arith.constant 307 : index
    %27 = vector.load %arg8[%c0_12, %c307] : memref<8x422xf32, #tpu.memory_space<vmem>>, vector<8x115xf32>
    tpu.vector_store %arg8[%c0_12, %c307], %26 {strides = array<i32>} : memref<8x422xf32, #tpu.memory_space<vmem>>, vector<8x115xf32>,
    %c0_13 = arith.constant 0 : index
    %c0_14 = arith.constant 0 : index
    %c0_15 = arith.constant 0 : index
    %28 = vector.load %arg1[%c0_13, %c0_14, %c0_15] : memref<2x4x422xf32, #tpu.memory_space<vmem>>, vector<1x4x422xf32>
    %29 = vector.shape_cast %28 : vector<1x4x422xf32> to vector<4x422xf32>
    %30 = vector.extract_strided_slice %29 {offsets = [0, 0], sizes = [4, 384], strides = [1, 1]} : vector<4x422xf32> to vector<4x384xf32>
    %c0_16 = arith.constant 0 : index
    %c0_17 = arith.constant 0 : index
    %31 = vector.load %arg6[%c0_16, %c0_17] : memref<36x384xf32, #tpu.memory_space<vmem>>, vector<4x384xf32>
    tpu.vector_store %arg6[%c0_16, %c0_17], %30 {strides = array<i32>} : memref<36x384xf32, #tpu.memory_space<vmem>>, vector<4x384xf32>,
    %32 = vector.extract_strided_slice %29 {offsets = [0, 1], sizes = [4, 384], strides = [1, 1]} : vector<4x422xf32> to vector<4x384xf32>
    %c4 = arith.constant 4 : index
    %c0_18 = arith.constant 0 : index
    %33 = vector.load %arg6[%c4, %c0_18] : memref<36x384xf32, #tpu.memory_space<vmem>>, vector<4x384xf32>
    tpu.vector_store %arg6[%c4, %c0_18], %32 {strides = array<i32>} : memref<36x384xf32, #tpu.memory_space<vmem>>, vector<4x384xf32>,
    %34 = vector.extract_strided_slice %29 {offsets = [0, 2], sizes = [4, 384], strides = [1, 1]} : vector<4x422xf32> to vector<4x384xf32>
    %c8 = arith.constant 8 : index
    %c0_19 = arith.constant 0 : index
    %35 = vector.load %arg6[%c8, %c0_19] : memref<36x384xf32, #tpu.memory_space<vmem>>, vector<4x384xf32>
    tpu.vector_store %arg6[%c8, %c0_19], %34 {strides = array<i32>} : memref<36x384xf32, #tpu.memory_space<vmem>>, vector<4x384xf32>,
    %36 = vector.extract_strided_slice %29 {offsets = [0, 18], sizes = [4, 384], strides = [1, 1]} : vector<4x422xf32> to vector<4x384xf32>
    %c12 = arith.constant 12 : index
    %c0_20 = arith.constant 0 : index
    %37 = vector.load %arg6[%c12, %c0_20] : memref<36x384xf32, #tpu.memory_space<vmem>>, vector<4x384xf32>
    tpu.vector_store %arg6[%c12, %c0_20], %36 {strides = array<i32>} : memref<36x384xf32, #tpu.memory_space<vmem>>, vector<4x384xf32>,
    %38 = vector.extract_strided_slice %29 {offsets = [0, 19], sizes = [4, 384], strides = [1, 1]} : vector<4x422xf32> to vector<4x384xf32>
    %c16 = arith.constant 16 : index
    %c0_21 = arith.constant 0 : index
    %39 = vector.load %arg6[%c16, %c0_21] : memref<36x384xf32, #tpu.memory_space<vmem>>, vector<4x384xf32>
    tpu.vector_store %arg6[%c16, %c0_21], %38 {strides = array<i32>} : memref<36x384xf32, #tpu.memory_space<vmem>>, vector<4x384xf32>,
    %40 = vector.extract_strided_slice %29 {offsets = [0, 20], sizes = [4, 384], strides = [1, 1]} : vector<4x422xf32> to vector<4x384xf32>
    %c20 = arith.constant 20 : index
    %c0_22 = arith.constant 0 : index
    %41 = vector.load %arg6[%c20, %c0_22] : memref<36x384xf32, #tpu.memory_space<vmem>>, vector<4x384xf32>
    tpu.vector_store %arg6[%c20, %c0_22], %40 {strides = array<i32>} : memref<36x384xf32, #tpu.memory_space<vmem>>, vector<4x384xf32>,
    %42 = vector.extract_strided_slice %29 {offsets = [0, 36], sizes = [4, 384], strides = [1, 1]} : vector<4x422xf32> to vector<4x384xf32>
    %c24 = arith.constant 24 : index
    %c0_23 = arith.constant 0 : index
    %43 = vector.load %arg6[%c24, %c0_23] : memref<36x384xf32, #tpu.memory_space<vmem>>, vector<4x384xf32>
    tpu.vector_store %arg6[%c24, %c0_23], %42 {strides = array<i32>} : memref<36x384xf32, #tpu.memory_space<vmem>>, vector<4x384xf32>,
    %44 = vector.extract_strided_slice %29 {offsets = [0, 37], sizes = [4, 384], strides = [1, 1]} : vector<4x422xf32> to vector<4x384xf32>
    %c28 = arith.constant 28 : index
    %c0_24 = arith.constant 0 : index
    %45 = vector.load %arg6[%c28, %c0_24] : memref<36x384xf32, #tpu.memory_space<vmem>>, vector<4x384xf32>
    tpu.vector_store %arg6[%c28, %c0_24], %44 {strides = array<i32>} : memref<36x384xf32, #tpu.memory_space<vmem>>, vector<4x384xf32>,
    %46 = vector.extract_strided_slice %29 {offsets = [0, 38], sizes = [4, 384], strides = [1, 1]} : vector<4x422xf32> to vector<4x384xf32>
    %c32 = arith.constant 32 : index
    %c0_25 = arith.constant 0 : index
    %47 = vector.load %arg6[%c32, %c0_25] : memref<36x384xf32, #tpu.memory_space<vmem>>, vector<4x384xf32>
    tpu.vector_store %arg6[%c32, %c0_25], %46 {strides = array<i32>} : memref<36x384xf32, #tpu.memory_space<vmem>>, vector<4x384xf32>,
    %c0_26 = arith.constant 0 : index
    %c0_27 = arith.constant 0 : index
    %48 = vector.load %arg6[%c0_26, %c0_27] : memref<36x384xf32, #tpu.memory_space<vmem>>, vector<36x384xf32>
    %cst_28 = arith.constant dense<0.000000e+00> : vector<8x384xf32>
    %49 = tpu.matmul %7, %48, %cst_28 {dimension_numbers = #tpu.dot_dimension_numbers<[1], [0], [0], [1], [0, 0, 1, 1], [], []>} : vector<8x36xf32>, vector<36x384xf32>, vector<8x384xf32> -> vector<8x384xf32>
    %50 = vector.broadcast %1 : vector<8x1xf32> to vector<8x384xf32>
    %51 = arith.addf %49, %50 : vector<8x384xf32>
    %cst_29 = arith.constant 0.000000e+00 : f32
    %52 = vector.broadcast %cst_29 : f32 to vector<8x384xf32>
    %53 = arith.maximumf %51, %52 : vector<8x384xf32>
    %cst_30 = arith.constant 0.000000e+00 : f32
    %54 = vector.shape_cast %21 : vector<1x384xi1> to vector<1x384xi1>
    %55 = vector.broadcast %54 : vector<1x384xi1> to vector<8x384xi1>
    %56 = vector.broadcast %cst_30 : f32 to vector<8x384xf32>
    %57 = arith.select %55, %53, %56 : vector<8x384xi1>, vector<8x384xf32>
    %58 = arith.mulf %57, %57 : vector<8x384xf32>
    %59 = tpu.concatenate %57, %58 in 0 : vector<8x384xf32>, vector<8x384xf32> -> vector<16x384xf32>
    %cst_31 = arith.constant dense<0.000000e+00> : vector<16xf32>
    %60 = vector.multi_reduction <add>, %59, %cst_31 [1] : vector<16x384xf32> to vector<16xf32>
    %61 = vector.shape_cast %60 : vector<16xf32> to vector<16x1xf32>
    %cst_32 = arith.constant 0.000000e+00 : f32
    %62 = vector.broadcast %cst_32 : f32 to vector<8x1xf32>
    %cst_33 = arith.constant 0.000000e+00 : f32
    %63 = vector.broadcast %cst_33 : f32 to vector<8x1xf32>
    %64 = vector.extract_strided_slice %61 {offsets = [0, 0], sizes = [4, 1], strides = [1, 1]} : vector<16x1xf32> to vector<4x1xf32>
    %cst_34 = arith.constant dense<0.000000e+00> : vector<1xf32>
    %65 = vector.multi_reduction <add>, %64, %cst_34 [0] : vector<4x1xf32> to vector<1xf32>
    %66 = vector.shape_cast %65 : vector<1xf32> to vector<1x1xf32>
    %67 = vector.extract_strided_slice %61 {offsets = [8, 0], sizes = [4, 1], strides = [1, 1]} : vector<16x1xf32> to vector<4x1xf32>
    %cst_35 = arith.constant dense<0.000000e+00> : vector<1xf32>
    %68 = vector.multi_reduction <add>, %67, %cst_35 [0] : vector<4x1xf32> to vector<1xf32>
    %69 = vector.shape_cast %68 : vector<1xf32> to vector<1x1xf32>
    %cst_36 = arith.constant 0.000000e+00 : f32
    %70 = vector.broadcast %cst_36 : f32 to vector<8x1xf32>
    %71 = arith.cmpf oge, %23, %70 : vector<8x1xf32>
    %cst_37 = arith.constant 4.000000e+00 : f32
    %72 = vector.broadcast %cst_37 : f32 to vector<8x1xf32>
    %73 = arith.cmpf olt, %23, %72 : vector<8x1xf32>
    %74 = arith.andi %71, %73 : vector<8x1xi1>
    %cst_38 = arith.constant 9.765625E-4 : f32
    %75 = vector.broadcast %cst_38 : f32 to vector<1x1xf32>
    %76 = arith.mulf %66, %75 : vector<1x1xf32>
    %77 = vector.shape_cast %76 : vector<1x1xf32> to vector<1x1xf32>
    %78 = vector.broadcast %77 : vector<1x1xf32> to vector<8x1xf32>
    %79 = arith.select %74, %78, %62 : vector<8x1xi1>, vector<8x1xf32>
    %cst_39 = arith.constant 9.765625E-4 : f32
    %80 = vector.broadcast %cst_39 : f32 to vector<1x1xf32>
    %81 = arith.mulf %69, %80 : vector<1x1xf32>
    %82 = vector.shape_cast %81 : vector<1x1xf32> to vector<1x1xf32>
    %83 = vector.broadcast %82 : vector<1x1xf32> to vector<8x1xf32>
    %84 = arith.select %74, %83, %63 : vector<8x1xi1>, vector<8x1xf32>
    %85 = vector.extract_strided_slice %61 {offsets = [4, 0], sizes = [4, 1], strides = [1, 1]} : vector<16x1xf32> to vector<4x1xf32>
    %cst_40 = arith.constant dense<0.000000e+00> : vector<1xf32>
    %86 = vector.multi_reduction <add>, %85, %cst_40 [0] : vector<4x1xf32> to vector<1xf32>
    %87 = vector.shape_cast %86 : vector<1xf32> to vector<1x1xf32>
    %88 = vector.extract_strided_slice %61 {offsets = [12, 0], sizes = [4, 1], strides = [1, 1]} : vector<16x1xf32> to vector<4x1xf32>
    %cst_41 = arith.constant dense<0.000000e+00> : vector<1xf32>
    %89 = vector.multi_reduction <add>, %88, %cst_41 [0] : vector<4x1xf32> to vector<1xf32>
    %90 = vector.shape_cast %89 : vector<1xf32> to vector<1x1xf32>
    %cst_42 = arith.constant 4.000000e+00 : f32
    %91 = vector.broadcast %cst_42 : f32 to vector<8x1xf32>
    %92 = arith.cmpf oge, %23, %91 : vector<8x1xf32>
    %cst_43 = arith.constant 8.000000e+00 : f32
    %93 = vector.broadcast %cst_43 : f32 to vector<8x1xf32>
    %94 = arith.cmpf olt, %23, %93 : vector<8x1xf32>
    %95 = arith.andi %92, %94 : vector<8x1xi1>
    %cst_44 = arith.constant 9.765625E-4 : f32
    %96 = vector.broadcast %cst_44 : f32 to vector<1x1xf32>
    %97 = arith.mulf %87, %96 : vector<1x1xf32>
    %98 = vector.shape_cast %97 : vector<1x1xf32> to vector<1x1xf32>
    %99 = vector.broadcast %98 : vector<1x1xf32> to vector<8x1xf32>
    %100 = arith.select %95, %99, %79 : vector<8x1xi1>, vector<8x1xf32>
    %cst_45 = arith.constant 9.765625E-4 : f32
    %101 = vector.broadcast %cst_45 : f32 to vector<1x1xf32>
    %102 = arith.mulf %90, %101 : vector<1x1xf32>
    %103 = vector.shape_cast %102 : vector<1x1xf32> to vector<1x1xf32>
    %104 = vector.broadcast %103 : vector<1x1xf32> to vector<8x1xf32>
    %105 = arith.select %95, %104, %84 : vector<8x1xi1>, vector<8x1xf32>
    %106 = arith.mulf %100, %100 : vector<8x1xf32>
    %107 = arith.subf %105, %106 : vector<8x1xf32>
    %cst_46 = arith.constant 0.000000e+00 : f32
    %108 = vector.broadcast %cst_46 : f32 to vector<8x1xf32>
    %109 = arith.maximumf %107, %108 : vector<8x1xf32>
    %cst_47 = arith.constant 9.99999974E-6 : f32
    %110 = vector.broadcast %cst_47 : f32 to vector<8x1xf32>
    %111 = arith.addf %109, %110 : vector<8x1xf32>
    %112 = math.rsqrt %111 : vector<8x1xf32>
    %113 = arith.mulf %112, %2 : vector<8x1xf32>
    %114 = vector.broadcast %100 : vector<8x1xf32> to vector<8x384xf32>
    %115 = arith.subf %53, %114 : vector<8x384xf32>
    %116 = vector.broadcast %113 : vector<8x1xf32> to vector<8x384xf32>
    %117 = arith.mulf %115, %116 : vector<8x384xf32>
    %118 = vector.broadcast %3 : vector<8x1xf32> to vector<8x384xf32>
    %119 = arith.addf %117, %118 : vector<8x384xf32>
    %cst_48 = arith.constant 0.000000e+00 : f32
    %120 = vector.shape_cast %21 : vector<1x384xi1> to vector<1x384xi1>
    %121 = vector.broadcast %120 : vector<1x384xi1> to vector<8x384xi1>
    %122 = vector.broadcast %cst_48 : f32 to vector<8x384xf32>
    %123 = arith.select %121, %119, %122 : vector<8x384xi1>, vector<8x384xf32>
    %124 = vector.extract_strided_slice %123 {offsets = [0, 0], sizes = [8, 288], strides = [1, 1]} : vector<8x384xf32> to vector<8x288xf32>
    %c0_49 = arith.constant 0 : index
    %c19 = arith.constant 19 : index
    %125 = vector.load %arg8[%c0_49, %c19] : memref<8x422xf32, #tpu.memory_space<vmem>>, vector<8x288xf32>
    tpu.vector_store %arg8[%c0_49, %c19], %124 {strides = array<i32>} : memref<8x422xf32, #tpu.memory_space<vmem>>, vector<8x288xf32>,
    %c0_50 = arith.constant 0 : index
    %c0_51 = arith.constant 0 : index
    %126 = vector.load %arg8[%c0_50, %c0_51] : memref<8x422xf32, #tpu.memory_space<vmem>>, vector<8x422xf32>
    %127 = vector.extract_strided_slice %126 {offsets = [0, 0], sizes = [8, 384], strides = [1, 1]} : vector<8x422xf32> to vector<8x384xf32>
    %c0_52 = arith.constant 0 : index
    %c0_53 = arith.constant 0 : index
    %128 = vector.load %arg7[%c0_52, %c0_53] : memref<72x384xf32, #tpu.memory_space<vmem>>, vector<8x384xf32>
    tpu.vector_store %arg7[%c0_52, %c0_53], %127 {strides = array<i32>} : memref<72x384xf32, #tpu.memory_space<vmem>>, vector<8x384xf32>,
    %129 = vector.extract_strided_slice %126 {offsets = [0, 1], sizes = [8, 384], strides = [1, 1]} : vector<8x422xf32> to vector<8x384xf32>
    %c8_54 = arith.constant 8 : index
    %c0_55 = arith.constant 0 : index
    %130 = vector.load %arg7[%c8_54, %c0_55] : memref<72x384xf32, #tpu.memory_space<vmem>>, vector<8x384xf32>
    tpu.vector_store %arg7[%c8_54, %c0_55], %129 {strides = array<i32>} : memref<72x384xf32, #tpu.memory_space<vmem>>, vector<8x384xf32>,
    %131 = vector.extract_strided_slice %126 {offsets = [0, 2], sizes = [8, 384], strides = [1, 1]} : vector<8x422xf32> to vector<8x384xf32>
    %c16_56 = arith.constant 16 : index
    %c0_57 = arith.constant 0 : index
    %132 = vector.load %arg7[%c16_56, %c0_57] : memref<72x384xf32, #tpu.memory_space<vmem>>, vector<8x384xf32>
    tpu.vector_store %arg7[%c16_56, %c0_57], %131 {strides = array<i32>} : memref<72x384xf32, #tpu.memory_space<vmem>>, vector<8x384xf32>,
    %133 = vector.extract_strided_slice %126 {offsets = [0, 18], sizes = [8, 384], strides = [1, 1]} : vector<8x422xf32> to vector<8x384xf32>
    %c24_58 = arith.constant 24 : index
    %c0_59 = arith.constant 0 : index
    %134 = vector.load %arg7[%c24_58, %c0_59] : memref<72x384xf32, #tpu.memory_space<vmem>>, vector<8x384xf32>
    tpu.vector_store %arg7[%c24_58, %c0_59], %133 {strides = array<i32>} : memref<72x384xf32, #tpu.memory_space<vmem>>, vector<8x384xf32>,
    %135 = vector.extract_strided_slice %126 {offsets = [0, 19], sizes = [8, 384], strides = [1, 1]} : vector<8x422xf32> to vector<8x384xf32>
    %c32_60 = arith.constant 32 : index
    %c0_61 = arith.constant 0 : index
    %136 = vector.load %arg7[%c32_60, %c0_61] : memref<72x384xf32, #tpu.memory_space<vmem>>, vector<8x384xf32>
    tpu.vector_store %arg7[%c32_60, %c0_61], %135 {strides = array<i32>} : memref<72x384xf32, #tpu.memory_space<vmem>>, vector<8x384xf32>,
    %137 = vector.extract_strided_slice %126 {offsets = [0, 20], sizes = [8, 384], strides = [1, 1]} : vector<8x422xf32> to vector<8x384xf32>
    %c40 = arith.constant 40 : index
    %c0_62 = arith.constant 0 : index
    %138 = vector.load %arg7[%c40, %c0_62] : memref<72x384xf32, #tpu.memory_space<vmem>>, vector<8x384xf32>
    tpu.vector_store %arg7[%c40, %c0_62], %137 {strides = array<i32>} : memref<72x384xf32, #tpu.memory_space<vmem>>, vector<8x384xf32>,
    %139 = vector.extract_strided_slice %126 {offsets = [0, 36], sizes = [8, 384], strides = [1, 1]} : vector<8x422xf32> to vector<8x384xf32>
    %c48 = arith.constant 48 : index
    %c0_63 = arith.constant 0 : index
    %140 = vector.load %arg7[%c48, %c0_63] : memref<72x384xf32, #tpu.memory_space<vmem>>, vector<8x384xf32>
    tpu.vector_store %arg7[%c48, %c0_63], %139 {strides = array<i32>} : memref<72x384xf32, #tpu.memory_space<vmem>>, vector<8x384xf32>,
    %141 = vector.extract_strided_slice %126 {offsets = [0, 37], sizes = [8, 384], strides = [1, 1]} : vector<8x422xf32> to vector<8x384xf32>
    %c56 = arith.constant 56 : index
    %c0_64 = arith.constant 0 : index
    %142 = vector.load %arg7[%c56, %c0_64] : memref<72x384xf32, #tpu.memory_space<vmem>>, vector<8x384xf32>
    tpu.vector_store %arg7[%c56, %c0_64], %141 {strides = array<i32>} : memref<72x384xf32, #tpu.memory_space<vmem>>, vector<8x384xf32>,
    %143 = vector.extract_strided_slice %126 {offsets = [0, 38], sizes = [8, 384], strides = [1, 1]} : vector<8x422xf32> to vector<8x384xf32>
    %c64 = arith.constant 64 : index
    %c0_65 = arith.constant 0 : index
    %144 = vector.load %arg7[%c64, %c0_65] : memref<72x384xf32, #tpu.memory_space<vmem>>, vector<8x384xf32>
    tpu.vector_store %arg7[%c64, %c0_65], %143 {strides = array<i32>} : memref<72x384xf32, #tpu.memory_space<vmem>>, vector<8x384xf32>,
    %c0_66 = arith.constant 0 : index
    %c0_67 = arith.constant 0 : index
    %145 = vector.load %arg7[%c0_66, %c0_67] : memref<72x384xf32, #tpu.memory_space<vmem>>, vector<72x384xf32>
    %cst_68 = arith.constant dense<0.000000e+00> : vector<8x384xf32>
    %146 = tpu.matmul %8, %145, %cst_68 {dimension_numbers = #tpu.dot_dimension_numbers<[1], [0], [0], [1], [0, 0, 1, 1], [], []>} : vector<8x72xf32>, vector<72x384xf32>, vector<8x384xf32> -> vector<8x384xf32>
    %147 = vector.broadcast %4 : vector<8x1xf32> to vector<8x384xf32>
    %148 = arith.addf %146, %147 : vector<8x384xf32>
    %cst_69 = arith.constant 0.000000e+00 : f32
    %149 = vector.broadcast %cst_69 : f32 to vector<8x384xf32>
    %150 = arith.maximumf %148, %149 : vector<8x384xf32>
    %cst_70 = arith.constant 0.000000e+00 : f32
    %151 = vector.shape_cast %21 : vector<1x384xi1> to vector<1x384xi1>
    %152 = vector.broadcast %151 : vector<1x384xi1> to vector<8x384xi1>
    %153 = vector.broadcast %cst_70 : f32 to vector<8x384xf32>
    %154 = arith.select %152, %150, %153 : vector<8x384xi1>, vector<8x384xf32>
    %155 = arith.mulf %154, %154 : vector<8x384xf32>
    %156 = tpu.concatenate %154, %155 in 0 : vector<8x384xf32>, vector<8x384xf32> -> vector<16x384xf32>
    %cst_71 = arith.constant dense<0.000000e+00> : vector<16xf32>
    %157 = vector.multi_reduction <add>, %156, %cst_71 [1] : vector<16x384xf32> to vector<16xf32>
    %158 = vector.shape_cast %157 : vector<16xf32> to vector<16x1xf32>
    %cst_72 = arith.constant 0.000000e+00 : f32
    %159 = vector.broadcast %cst_72 : f32 to vector<8x1xf32>
    %cst_73 = arith.constant 0.000000e+00 : f32
    %160 = vector.broadcast %cst_73 : f32 to vector<8x1xf32>
    %161 = vector.extract_strided_slice %158 {offsets = [0, 0], sizes = [4, 1], strides = [1, 1]} : vector<16x1xf32> to vector<4x1xf32>
    %cst_74 = arith.constant dense<0.000000e+00> : vector<1xf32>
    %162 = vector.multi_reduction <add>, %161, %cst_74 [0] : vector<4x1xf32> to vector<1xf32>
    %163 = vector.shape_cast %162 : vector<1xf32> to vector<1x1xf32>
    %164 = vector.extract_strided_slice %158 {offsets = [8, 0], sizes = [4, 1], strides = [1, 1]} : vector<16x1xf32> to vector<4x1xf32>
    %cst_75 = arith.constant dense<0.000000e+00> : vector<1xf32>
    %165 = vector.multi_reduction <add>, %164, %cst_75 [0] : vector<4x1xf32> to vector<1xf32>
    %166 = vector.shape_cast %165 : vector<1xf32> to vector<1x1xf32>
    %cst_76 = arith.constant 0.000000e+00 : f32
    %167 = vector.broadcast %cst_76 : f32 to vector<8x1xf32>
    %168 = arith.cmpf oge, %23, %167 : vector<8x1xf32>
    %cst_77 = arith.constant 4.000000e+00 : f32
    %169 = vector.broadcast %cst_77 : f32 to vector<8x1xf32>
    %170 = arith.cmpf olt, %23, %169 : vector<8x1xf32>
    %171 = arith.andi %168, %170 : vector<8x1xi1>
    %cst_78 = arith.constant 9.765625E-4 : f32
    %172 = vector.broadcast %cst_78 : f32 to vector<1x1xf32>
    %173 = arith.mulf %163, %172 : vector<1x1xf32>
    %174 = vector.shape_cast %173 : vector<1x1xf32> to vector<1x1xf32>
    %175 = vector.broadcast %174 : vector<1x1xf32> to vector<8x1xf32>
    %176 = arith.select %171, %175, %159 : vector<8x1xi1>, vector<8x1xf32>
    %cst_79 = arith.constant 9.765625E-4 : f32
    %177 = vector.broadcast %cst_79 : f32 to vector<1x1xf32>
    %178 = arith.mulf %166, %177 : vector<1x1xf32>
    %179 = vector.shape_cast %178 : vector<1x1xf32> to vector<1x1xf32>
    %180 = vector.broadcast %179 : vector<1x1xf32> to vector<8x1xf32>
    %181 = arith.select %171, %180, %160 : vector<8x1xi1>, vector<8x1xf32>
    %182 = vector.extract_strided_slice %158 {offsets = [4, 0], sizes = [4, 1], strides = [1, 1]} : vector<16x1xf32> to vector<4x1xf32>
    %cst_80 = arith.constant dense<0.000000e+00> : vector<1xf32>
    %183 = vector.multi_reduction <add>, %182, %cst_80 [0] : vector<4x1xf32> to vector<1xf32>
    %184 = vector.shape_cast %183 : vector<1xf32> to vector<1x1xf32>
    %185 = vector.extract_strided_slice %158 {offsets = [12, 0], sizes = [4, 1], strides = [1, 1]} : vector<16x1xf32> to vector<4x1xf32>
    %cst_81 = arith.constant dense<0.000000e+00> : vector<1xf32>
    %186 = vector.multi_reduction <add>, %185, %cst_81 [0] : vector<4x1xf32> to vector<1xf32>
    %187 = vector.shape_cast %186 : vector<1xf32> to vector<1x1xf32>
    %cst_82 = arith.constant 4.000000e+00 : f32
    %188 = vector.broadcast %cst_82 : f32 to vector<8x1xf32>
    %189 = arith.cmpf oge, %23, %188 : vector<8x1xf32>
    %cst_83 = arith.constant 8.000000e+00 : f32
    %190 = vector.broadcast %cst_83 : f32 to vector<8x1xf32>
    %191 = arith.cmpf olt, %23, %190 : vector<8x1xf32>
    %192 = arith.andi %189, %191 : vector<8x1xi1>
    %cst_84 = arith.constant 9.765625E-4 : f32
    %193 = vector.broadcast %cst_84 : f32 to vector<1x1xf32>
    %194 = arith.mulf %184, %193 : vector<1x1xf32>
    %195 = vector.shape_cast %194 : vector<1x1xf32> to vector<1x1xf32>
    %196 = vector.broadcast %195 : vector<1x1xf32> to vector<8x1xf32>
    %197 = arith.select %192, %196, %176 : vector<8x1xi1>, vector<8x1xf32>
    %cst_85 = arith.constant 9.765625E-4 : f32
    %198 = vector.broadcast %cst_85 : f32 to vector<1x1xf32>
    %199 = arith.mulf %187, %198 : vector<1x1xf32>
    %200 = vector.shape_cast %199 : vector<1x1xf32> to vector<1x1xf32>
    %201 = vector.broadcast %200 : vector<1x1xf32> to vector<8x1xf32>
    %202 = arith.select %192, %201, %181 : vector<8x1xi1>, vector<8x1xf32>
    %203 = arith.mulf %197, %197 : vector<8x1xf32>
    %204 = arith.subf %202, %203 : vector<8x1xf32>
    %cst_86 = arith.constant 0.000000e+00 : f32
    %205 = vector.broadcast %cst_86 : f32 to vector<8x1xf32>
    %206 = arith.maximumf %204, %205 : vector<8x1xf32>
    %cst_87 = arith.constant 9.99999974E-6 : f32
    %207 = vector.broadcast %cst_87 : f32 to vector<8x1xf32>
    %208 = arith.addf %206, %207 : vector<8x1xf32>
    %209 = math.rsqrt %208 : vector<8x1xf32>
    %210 = arith.mulf %209, %5 : vector<8x1xf32>
    %211 = vector.broadcast %197 : vector<8x1xf32> to vector<8x384xf32>
    %212 = arith.subf %150, %211 : vector<8x384xf32>
    %213 = vector.broadcast %210 : vector<8x1xf32> to vector<8x384xf32>
    %214 = arith.mulf %212, %213 : vector<8x384xf32>
    %215 = vector.broadcast %6 : vector<8x1xf32> to vector<8x384xf32>
    %216 = arith.addf %214, %215 : vector<8x384xf32>
    %c0_88 = arith.constant 0 : index
    %c0_89 = arith.constant 0 : index
    %c0_90 = arith.constant 0 : index
    %217 = vector.load %arg5[%c0_88, %c0_89, %c0_90] : memref<2x8x384xf32, #tpu.memory_space<vmem>>, vector<1x8x384xf32>
    %218 = vector.shape_cast %217 : vector<1x8x384xf32> to vector<8x384xf32>
    %219 = vector.shape_cast %216 : vector<8x384xf32> to vector<1x8x384xf32>
    tpu.vector_store %arg5[%c0_88, %c0_89, %c0_90], %219 {strides = array<i32>} : memref<2x8x384xf32, #tpu.memory_space<vmem>>, vector<1x8x384xf32>,
    %c1 = arith.constant 1 : index
    %c0_91 = arith.constant 0 : index
    %c0_92 = arith.constant 0 : index
    %220 = vector.load %arg1[%c1, %c0_91, %c0_92] : memref<2x4x422xf32, #tpu.memory_space<vmem>>, vector<1x4x422xf32>
    %221 = vector.shape_cast %220 : vector<1x4x422xf32> to vector<4x422xf32>
    %222 = vector.extract_strided_slice %221 {offsets = [0, 0], sizes = [4, 384], strides = [1, 1]} : vector<4x422xf32> to vector<4x384xf32>
    %c0_93 = arith.constant 0 : index
    %c0_94 = arith.constant 0 : index
    %223 = vector.load %arg6[%c0_93, %c0_94] : memref<36x384xf32, #tpu.memory_space<vmem>>, vector<4x384xf32>
    tpu.vector_store %arg6[%c0_93, %c0_94], %222 {strides = array<i32>} : memref<36x384xf32, #tpu.memory_space<vmem>>, vector<4x384xf32>,
    %224 = vector.extract_strided_slice %221 {offsets = [0, 1], sizes = [4, 384], strides = [1, 1]} : vector<4x422xf32> to vector<4x384xf32>
    %c4_95 = arith.constant 4 : index
    %c0_96 = arith.constant 0 : index
    %225 = vector.load %arg6[%c4_95, %c0_96] : memref<36x384xf32, #tpu.memory_space<vmem>>, vector<4x384xf32>
    tpu.vector_store %arg6[%c4_95, %c0_96], %224 {strides = array<i32>} : memref<36x384xf32, #tpu.memory_space<vmem>>, vector<4x384xf32>,
    %226 = vector.extract_strided_slice %221 {offsets = [0, 2], sizes = [4, 384], strides = [1, 1]} : vector<4x422xf32> to vector<4x384xf32>
    %c8_97 = arith.constant 8 : index
    %c0_98 = arith.constant 0 : index
    %227 = vector.load %arg6[%c8_97, %c0_98] : memref<36x384xf32, #tpu.memory_space<vmem>>, vector<4x384xf32>
    tpu.vector_store %arg6[%c8_97, %c0_98], %226 {strides = array<i32>} : memref<36x384xf32, #tpu.memory_space<vmem>>, vector<4x384xf32>,
    %228 = vector.extract_strided_slice %221 {offsets = [0, 18], sizes = [4, 384], strides = [1, 1]} : vector<4x422xf32> to vector<4x384xf32>
    %c12_99 = arith.constant 12 : index
    %c0_100 = arith.constant 0 : index
    %229 = vector.load %arg6[%c12_99, %c0_100] : memref<36x384xf32, #tpu.memory_space<vmem>>, vector<4x384xf32>
    tpu.vector_store %arg6[%c12_99, %c0_100], %228 {strides = array<i32>} : memref<36x384xf32, #tpu.memory_space<vmem>>, vector<4x384xf32>,
    %230 = vector.extract_strided_slice %221 {offsets = [0, 19], sizes = [4, 384], strides = [1, 1]} : vector<4x422xf32> to vector<4x384xf32>
    %c16_101 = arith.constant 16 : index
    %c0_102 = arith.constant 0 : index
    %231 = vector.load %arg6[%c16_101, %c0_102] : memref<36x384xf32, #tpu.memory_space<vmem>>, vector<4x384xf32>
    tpu.vector_store %arg6[%c16_101, %c0_102], %230 {strides = array<i32>} : memref<36x384xf32, #tpu.memory_space<vmem>>, vector<4x384xf32>,
    %232 = vector.extract_strided_slice %221 {offsets = [0, 20], sizes = [4, 384], strides = [1, 1]} : vector<4x422xf32> to vector<4x384xf32>
    %c20_103 = arith.constant 20 : index
    %c0_104 = arith.constant 0 : index
    %233 = vector.load %arg6[%c20_103, %c0_104] : memref<36x384xf32, #tpu.memory_space<vmem>>, vector<4x384xf32>
    tpu.vector_store %arg6[%c20_103, %c0_104], %232 {strides = array<i32>} : memref<36x384xf32, #tpu.memory_space<vmem>>, vector<4x384xf32>,
    %234 = vector.extract_strided_slice %221 {offsets = [0, 36], sizes = [4, 384], strides = [1, 1]} : vector<4x422xf32> to vector<4x384xf32>
    %c24_105 = arith.constant 24 : index
    %c0_106 = arith.constant 0 : index
    %235 = vector.load %arg6[%c24_105, %c0_106] : memref<36x384xf32, #tpu.memory_space<vmem>>, vector<4x384xf32>
    tpu.vector_store %arg6[%c24_105, %c0_106], %234 {strides = array<i32>} : memref<36x384xf32, #tpu.memory_space<vmem>>, vector<4x384xf32>,
    %236 = vector.extract_strided_slice %221 {offsets = [0, 37], sizes = [4, 384], strides = [1, 1]} : vector<4x422xf32> to vector<4x384xf32>
    %c28_107 = arith.constant 28 : index
    %c0_108 = arith.constant 0 : index
    %237 = vector.load %arg6[%c28_107, %c0_108] : memref<36x384xf32, #tpu.memory_space<vmem>>, vector<4x384xf32>
    tpu.vector_store %arg6[%c28_107, %c0_108], %236 {strides = array<i32>} : memref<36x384xf32, #tpu.memory_space<vmem>>, vector<4x384xf32>,
    %238 = vector.extract_strided_slice %221 {offsets = [0, 38], sizes = [4, 384], strides = [1, 1]} : vector<4x422xf32> to vector<4x384xf32>
    %c32_109 = arith.constant 32 : index
    %c0_110 = arith.constant 0 : index
    %239 = vector.load %arg6[%c32_109, %c0_110] : memref<36x384xf32, #tpu.memory_space<vmem>>, vector<4x384xf32>
    tpu.vector_store %arg6[%c32_109, %c0_110], %238 {strides = array<i32>} : memref<36x384xf32, #tpu.memory_space<vmem>>, vector<4x384xf32>,
    %c0_111 = arith.constant 0 : index
    %c0_112 = arith.constant 0 : index
    %240 = vector.load %arg6[%c0_111, %c0_112] : memref<36x384xf32, #tpu.memory_space<vmem>>, vector<36x384xf32>
    %cst_113 = arith.constant dense<0.000000e+00> : vector<8x384xf32>
    %241 = tpu.matmul %7, %240, %cst_113 {dimension_numbers = #tpu.dot_dimension_numbers<[1], [0], [0], [1], [0, 0, 1, 1], [], []>} : vector<8x36xf32>, vector<36x384xf32>, vector<8x384xf32> -> vector<8x384xf32>
    %242 = vector.broadcast %1 : vector<8x1xf32> to vector<8x384xf32>
    %243 = arith.addf %241, %242 : vector<8x384xf32>
    %cst_114 = arith.constant 0.000000e+00 : f32
    %244 = vector.broadcast %cst_114 : f32 to vector<8x384xf32>
    %245 = arith.maximumf %243, %244 : vector<8x384xf32>
    %cst_115 = arith.constant 0.000000e+00 : f32
    %246 = vector.shape_cast %21 : vector<1x384xi1> to vector<1x384xi1>
    %247 = vector.broadcast %246 : vector<1x384xi1> to vector<8x384xi1>
    %248 = vector.broadcast %cst_115 : f32 to vector<8x384xf32>
    %249 = arith.select %247, %245, %248 : vector<8x384xi1>, vector<8x384xf32>
    %250 = arith.mulf %249, %249 : vector<8x384xf32>
    %251 = tpu.concatenate %249, %250 in 0 : vector<8x384xf32>, vector<8x384xf32> -> vector<16x384xf32>
    %cst_116 = arith.constant dense<0.000000e+00> : vector<16xf32>
    %252 = vector.multi_reduction <add>, %251, %cst_116 [1] : vector<16x384xf32> to vector<16xf32>
    %253 = vector.shape_cast %252 : vector<16xf32> to vector<16x1xf32>
    %cst_117 = arith.constant 0.000000e+00 : f32
    %254 = vector.broadcast %cst_117 : f32 to vector<8x1xf32>
    %cst_118 = arith.constant 0.000000e+00 : f32
    %255 = vector.broadcast %cst_118 : f32 to vector<8x1xf32>
    %256 = vector.extract_strided_slice %253 {offsets = [0, 0], sizes = [4, 1], strides = [1, 1]} : vector<16x1xf32> to vector<4x1xf32>
    %cst_119 = arith.constant dense<0.000000e+00> : vector<1xf32>
    %257 = vector.multi_reduction <add>, %256, %cst_119 [0] : vector<4x1xf32> to vector<1xf32>
    %258 = vector.shape_cast %257 : vector<1xf32> to vector<1x1xf32>
    %259 = vector.extract_strided_slice %253 {offsets = [8, 0], sizes = [4, 1], strides = [1, 1]} : vector<16x1xf32> to vector<4x1xf32>
    %cst_120 = arith.constant dense<0.000000e+00> : vector<1xf32>
    %260 = vector.multi_reduction <add>, %259, %cst_120 [0] : vector<4x1xf32> to vector<1xf32>
    %261 = vector.shape_cast %260 : vector<1xf32> to vector<1x1xf32>
    %cst_121 = arith.constant 0.000000e+00 : f32
    %262 = vector.broadcast %cst_121 : f32 to vector<8x1xf32>
    %263 = arith.cmpf oge, %23, %262 : vector<8x1xf32>
    %cst_122 = arith.constant 4.000000e+00 : f32
    %264 = vector.broadcast %cst_122 : f32 to vector<8x1xf32>
    %265 = arith.cmpf olt, %23, %264 : vector<8x1xf32>
    %266 = arith.andi %263, %265 : vector<8x1xi1>
    %cst_123 = arith.constant 9.765625E-4 : f32
    %267 = vector.broadcast %cst_123 : f32 to vector<1x1xf32>
    %268 = arith.mulf %258, %267 : vector<1x1xf32>
    %269 = vector.shape_cast %268 : vector<1x1xf32> to vector<1x1xf32>
    %270 = vector.broadcast %269 : vector<1x1xf32> to vector<8x1xf32>
    %271 = arith.select %266, %270, %254 : vector<8x1xi1>, vector<8x1xf32>
    %cst_124 = arith.constant 9.765625E-4 : f32
    %272 = vector.broadcast %cst_124 : f32 to vector<1x1xf32>
    %273 = arith.mulf %261, %272 : vector<1x1xf32>
    %274 = vector.shape_cast %273 : vector<1x1xf32> to vector<1x1xf32>
    %275 = vector.broadcast %274 : vector<1x1xf32> to vector<8x1xf32>
    %276 = arith.select %266, %275, %255 : vector<8x1xi1>, vector<8x1xf32>
    %277 = vector.extract_strided_slice %253 {offsets = [4, 0], sizes = [4, 1], strides = [1, 1]} : vector<16x1xf32> to vector<4x1xf32>
    %cst_125 = arith.constant dense<0.000000e+00> : vector<1xf32>
    %278 = vector.multi_reduction <add>, %277, %cst_125 [0] : vector<4x1xf32> to vector<1xf32>
    %279 = vector.shape_cast %278 : vector<1xf32> to vector<1x1xf32>
    %280 = vector.extract_strided_slice %253 {offsets = [12, 0], sizes = [4, 1], strides = [1, 1]} : vector<16x1xf32> to vector<4x1xf32>
    %cst_126 = arith.constant dense<0.000000e+00> : vector<1xf32>
    %281 = vector.multi_reduction <add>, %280, %cst_126 [0] : vector<4x1xf32> to vector<1xf32>
    %282 = vector.shape_cast %281 : vector<1xf32> to vector<1x1xf32>
    %cst_127 = arith.constant 4.000000e+00 : f32
    %283 = vector.broadcast %cst_127 : f32 to vector<8x1xf32>
    %284 = arith.cmpf oge, %23, %283 : vector<8x1xf32>
    %cst_128 = arith.constant 8.000000e+00 : f32
    %285 = vector.broadcast %cst_128 : f32 to vector<8x1xf32>
    %286 = arith.cmpf olt, %23, %285 : vector<8x1xf32>
    %287 = arith.andi %284, %286 : vector<8x1xi1>
    %cst_129 = arith.constant 9.765625E-4 : f32
    %288 = vector.broadcast %cst_129 : f32 to vector<1x1xf32>
    %289 = arith.mulf %279, %288 : vector<1x1xf32>
    %290 = vector.shape_cast %289 : vector<1x1xf32> to vector<1x1xf32>
    %291 = vector.broadcast %290 : vector<1x1xf32> to vector<8x1xf32>
    %292 = arith.select %287, %291, %271 : vector<8x1xi1>, vector<8x1xf32>
    %cst_130 = arith.constant 9.765625E-4 : f32
    %293 = vector.broadcast %cst_130 : f32 to vector<1x1xf32>
    %294 = arith.mulf %282, %293 : vector<1x1xf32>
    %295 = vector.shape_cast %294 : vector<1x1xf32> to vector<1x1xf32>
    %296 = vector.broadcast %295 : vector<1x1xf32> to vector<8x1xf32>
    %297 = arith.select %287, %296, %276 : vector<8x1xi1>, vector<8x1xf32>
    %298 = arith.mulf %292, %292 : vector<8x1xf32>
    %299 = arith.subf %297, %298 : vector<8x1xf32>
    %cst_131 = arith.constant 0.000000e+00 : f32
    %300 = vector.broadcast %cst_131 : f32 to vector<8x1xf32>
    %301 = arith.maximumf %299, %300 : vector<8x1xf32>
    %cst_132 = arith.constant 9.99999974E-6 : f32
    %302 = vector.broadcast %cst_132 : f32 to vector<8x1xf32>
    %303 = arith.addf %301, %302 : vector<8x1xf32>
    %304 = math.rsqrt %303 : vector<8x1xf32>
    %305 = arith.mulf %304, %2 : vector<8x1xf32>
    %306 = vector.broadcast %292 : vector<8x1xf32> to vector<8x384xf32>
    %307 = arith.subf %245, %306 : vector<8x384xf32>
    %308 = vector.broadcast %305 : vector<8x1xf32> to vector<8x384xf32>
    %309 = arith.mulf %307, %308 : vector<8x384xf32>
    %310 = vector.broadcast %3 : vector<8x1xf32> to vector<8x384xf32>
    %311 = arith.addf %309, %310 : vector<8x384xf32>
    %cst_133 = arith.constant 0.000000e+00 : f32
    %312 = vector.shape_cast %21 : vector<1x384xi1> to vector<1x384xi1>
    %313 = vector.broadcast %312 : vector<1x384xi1> to vector<8x384xi1>
    %314 = vector.broadcast %cst_133 : f32 to vector<8x384xf32>
    %315 = arith.select %313, %311, %314 : vector<8x384xi1>, vector<8x384xf32>
    %316 = vector.extract_strided_slice %315 {offsets = [0, 0], sizes = [8, 288], strides = [1, 1]} : vector<8x384xf32> to vector<8x288xf32>
    %c0_134 = arith.constant 0 : index
    %c19_135 = arith.constant 19 : index
    %317 = vector.load %arg8[%c0_134, %c19_135] : memref<8x422xf32, #tpu.memory_space<vmem>>, vector<8x288xf32>
    tpu.vector_store %arg8[%c0_134, %c19_135], %316 {strides = array<i32>} : memref<8x422xf32, #tpu.memory_space<vmem>>, vector<8x288xf32>,
    %c0_136 = arith.constant 0 : index
    %c0_137 = arith.constant 0 : index
    %318 = vector.load %arg8[%c0_136, %c0_137] : memref<8x422xf32, #tpu.memory_space<vmem>>, vector<8x422xf32>
    %319 = vector.extract_strided_slice %318 {offsets = [0, 0], sizes = [8, 384], strides = [1, 1]} : vector<8x422xf32> to vector<8x384xf32>
    %c0_138 = arith.constant 0 : index
    %c0_139 = arith.constant 0 : index
    %320 = vector.load %arg7[%c0_138, %c0_139] : memref<72x384xf32, #tpu.memory_space<vmem>>, vector<8x384xf32>
    tpu.vector_store %arg7[%c0_138, %c0_139], %319 {strides = array<i32>} : memref<72x384xf32, #tpu.memory_space<vmem>>, vector<8x384xf32>,
    %321 = vector.extract_strided_slice %318 {offsets = [0, 1], sizes = [8, 384], strides = [1, 1]} : vector<8x422xf32> to vector<8x384xf32>
    %c8_140 = arith.constant 8 : index
    %c0_141 = arith.constant 0 : index
    %322 = vector.load %arg7[%c8_140, %c0_141] : memref<72x384xf32, #tpu.memory_space<vmem>>, vector<8x384xf32>
    tpu.vector_store %arg7[%c8_140, %c0_141], %321 {strides = array<i32>} : memref<72x384xf32, #tpu.memory_space<vmem>>, vector<8x384xf32>,
    %323 = vector.extract_strided_slice %318 {offsets = [0, 2], sizes = [8, 384], strides = [1, 1]} : vector<8x422xf32> to vector<8x384xf32>
    %c16_142 = arith.constant 16 : index
    %c0_143 = arith.constant 0 : index
    %324 = vector.load %arg7[%c16_142, %c0_143] : memref<72x384xf32, #tpu.memory_space<vmem>>, vector<8x384xf32>
    tpu.vector_store %arg7[%c16_142, %c0_143], %323 {strides = array<i32>} : memref<72x384xf32, #tpu.memory_space<vmem>>, vector<8x384xf32>,
    %325 = vector.extract_strided_slice %318 {offsets = [0, 18], sizes = [8, 384], strides = [1, 1]} : vector<8x422xf32> to vector<8x384xf32>
    %c24_144 = arith.constant 24 : index
    %c0_145 = arith.constant 0 : index
    %326 = vector.load %arg7[%c24_144, %c0_145] : memref<72x384xf32, #tpu.memory_space<vmem>>, vector<8x384xf32>
    tpu.vector_store %arg7[%c24_144, %c0_145], %325 {strides = array<i32>} : memref<72x384xf32, #tpu.memory_space<vmem>>, vector<8x384xf32>,
    %327 = vector.extract_strided_slice %318 {offsets = [0, 19], sizes = [8, 384], strides = [1, 1]} : vector<8x422xf32> to vector<8x384xf32>
    %c32_146 = arith.constant 32 : index
    %c0_147 = arith.constant 0 : index
    %328 = vector.load %arg7[%c32_146, %c0_147] : memref<72x384xf32, #tpu.memory_space<vmem>>, vector<8x384xf32>
    tpu.vector_store %arg7[%c32_146, %c0_147], %327 {strides = array<i32>} : memref<72x384xf32, #tpu.memory_space<vmem>>, vector<8x384xf32>,
    %329 = vector.extract_strided_slice %318 {offsets = [0, 20], sizes = [8, 384], strides = [1, 1]} : vector<8x422xf32> to vector<8x384xf32>
    %c40_148 = arith.constant 40 : index
    %c0_149 = arith.constant 0 : index
    %330 = vector.load %arg7[%c40_148, %c0_149] : memref<72x384xf32, #tpu.memory_space<vmem>>, vector<8x384xf32>
    tpu.vector_store %arg7[%c40_148, %c0_149], %329 {strides = array<i32>} : memref<72x384xf32, #tpu.memory_space<vmem>>, vector<8x384xf32>,
    %331 = vector.extract_strided_slice %318 {offsets = [0, 36], sizes = [8, 384], strides = [1, 1]} : vector<8x422xf32> to vector<8x384xf32>
    %c48_150 = arith.constant 48 : index
    %c0_151 = arith.constant 0 : index
    %332 = vector.load %arg7[%c48_150, %c0_151] : memref<72x384xf32, #tpu.memory_space<vmem>>, vector<8x384xf32>
    tpu.vector_store %arg7[%c48_150, %c0_151], %331 {strides = array<i32>} : memref<72x384xf32, #tpu.memory_space<vmem>>, vector<8x384xf32>,
    %333 = vector.extract_strided_slice %318 {offsets = [0, 37], sizes = [8, 384], strides = [1, 1]} : vector<8x422xf32> to vector<8x384xf32>
    %c56_152 = arith.constant 56 : index
    %c0_153 = arith.constant 0 : index
    %334 = vector.load %arg7[%c56_152, %c0_153] : memref<72x384xf32, #tpu.memory_space<vmem>>, vector<8x384xf32>
    tpu.vector_store %arg7[%c56_152, %c0_153], %333 {strides = array<i32>} : memref<72x384xf32, #tpu.memory_space<vmem>>, vector<8x384xf32>,
    %335 = vector.extract_strided_slice %318 {offsets = [0, 38], sizes = [8, 384], strides = [1, 1]} : vector<8x422xf32> to vector<8x384xf32>
    %c64_154 = arith.constant 64 : index
    %c0_155 = arith.constant 0 : index
    %336 = vector.load %arg7[%c64_154, %c0_155] : memref<72x384xf32, #tpu.memory_space<vmem>>, vector<8x384xf32>
    tpu.vector_store %arg7[%c64_154, %c0_155], %335 {strides = array<i32>} : memref<72x384xf32, #tpu.memory_space<vmem>>, vector<8x384xf32>,
    %c0_156 = arith.constant 0 : index
    %c0_157 = arith.constant 0 : index
    %337 = vector.load %arg7[%c0_156, %c0_157] : memref<72x384xf32, #tpu.memory_space<vmem>>, vector<72x384xf32>
    %cst_158 = arith.constant dense<0.000000e+00> : vector<8x384xf32>
    %338 = tpu.matmul %8, %337, %cst_158 {dimension_numbers = #tpu.dot_dimension_numbers<[1], [0], [0], [1], [0, 0, 1, 1], [], []>} : vector<8x72xf32>, vector<72x384xf32>, vector<8x384xf32> -> vector<8x384xf32>
    %339 = vector.broadcast %4 : vector<8x1xf32> to vector<8x384xf32>
    %340 = arith.addf %338, %339 : vector<8x384xf32>
    %cst_159 = arith.constant 0.000000e+00 : f32
    %341 = vector.broadcast %cst_159 : f32 to vector<8x384xf32>
    %342 = arith.maximumf %340, %341 : vector<8x384xf32>
    %cst_160 = arith.constant 0.000000e+00 : f32
    %343 = vector.shape_cast %21 : vector<1x384xi1> to vector<1x384xi1>
    %344 = vector.broadcast %343 : vector<1x384xi1> to vector<8x384xi1>
    %345 = vector.broadcast %cst_160 : f32 to vector<8x384xf32>
    %346 = arith.select %344, %342, %345 : vector<8x384xi1>, vector<8x384xf32>
    %347 = arith.mulf %346, %346 : vector<8x384xf32>
    %348 = tpu.concatenate %346, %347 in 0 : vector<8x384xf32>, vector<8x384xf32> -> vector<16x384xf32>
    %cst_161 = arith.constant dense<0.000000e+00> : vector<16xf32>
    %349 = vector.multi_reduction <add>, %348, %cst_161 [1] : vector<16x384xf32> to vector<16xf32>
    %350 = vector.shape_cast %349 : vector<16xf32> to vector<16x1xf32>
    %cst_162 = arith.constant 0.000000e+00 : f32
    %351 = vector.broadcast %cst_162 : f32 to vector<8x1xf32>
    %cst_163 = arith.constant 0.000000e+00 : f32
    %352 = vector.broadcast %cst_163 : f32 to vector<8x1xf32>
    %353 = vector.extract_strided_slice %350 {offsets = [0, 0], sizes = [4, 1], strides = [1, 1]} : vector<16x1xf32> to vector<4x1xf32>
    %cst_164 = arith.constant dense<0.000000e+00> : vector<1xf32>
    %354 = vector.multi_reduction <add>, %353, %cst_164 [0] : vector<4x1xf32> to vector<1xf32>
    %355 = vector.shape_cast %354 : vector<1xf32> to vector<1x1xf32>
    %356 = vector.extract_strided_slice %350 {offsets = [8, 0], sizes = [4, 1], strides = [1, 1]} : vector<16x1xf32> to vector<4x1xf32>
    %cst_165 = arith.constant dense<0.000000e+00> : vector<1xf32>
    %357 = vector.multi_reduction <add>, %356, %cst_165 [0] : vector<4x1xf32> to vector<1xf32>
    %358 = vector.shape_cast %357 : vector<1xf32> to vector<1x1xf32>
    %cst_166 = arith.constant 0.000000e+00 : f32
    %359 = vector.broadcast %cst_166 : f32 to vector<8x1xf32>
    %360 = arith.cmpf oge, %23, %359 : vector<8x1xf32>
    %cst_167 = arith.constant 4.000000e+00 : f32
    %361 = vector.broadcast %cst_167 : f32 to vector<8x1xf32>
    %362 = arith.cmpf olt, %23, %361 : vector<8x1xf32>
    %363 = arith.andi %360, %362 : vector<8x1xi1>
    %cst_168 = arith.constant 9.765625E-4 : f32
    %364 = vector.broadcast %cst_168 : f32 to vector<1x1xf32>
    %365 = arith.mulf %355, %364 : vector<1x1xf32>
    %366 = vector.shape_cast %365 : vector<1x1xf32> to vector<1x1xf32>
    %367 = vector.broadcast %366 : vector<1x1xf32> to vector<8x1xf32>
    %368 = arith.select %363, %367, %351 : vector<8x1xi1>, vector<8x1xf32>
    %cst_169 = arith.constant 9.765625E-4 : f32
    %369 = vector.broadcast %cst_169 : f32 to vector<1x1xf32>
    %370 = arith.mulf %358, %369 : vector<1x1xf32>
    %371 = vector.shape_cast %370 : vector<1x1xf32> to vector<1x1xf32>
    %372 = vector.broadcast %371 : vector<1x1xf32> to vector<8x1xf32>
    %373 = arith.select %363, %372, %352 : vector<8x1xi1>, vector<8x1xf32>
    %374 = vector.extract_strided_slice %350 {offsets = [4, 0], sizes = [4, 1], strides = [1, 1]} : vector<16x1xf32> to vector<4x1xf32>
    %cst_170 = arith.constant dense<0.000000e+00> : vector<1xf32>
    %375 = vector.multi_reduction <add>, %374, %cst_170 [0] : vector<4x1xf32> to vector<1xf32>
    %376 = vector.shape_cast %375 : vector<1xf32> to vector<1x1xf32>
    %377 = vector.extract_strided_slice %350 {offsets = [12, 0], sizes = [4, 1], strides = [1, 1]} : vector<16x1xf32> to vector<4x1xf32>
    %cst_171 = arith.constant dense<0.000000e+00> : vector<1xf32>
    %378 = vector.multi_reduction <add>, %377, %cst_171 [0] : vector<4x1xf32> to vector<1xf32>
    %379 = vector.shape_cast %378 : vector<1xf32> to vector<1x1xf32>
    %cst_172 = arith.constant 4.000000e+00 : f32
    %380 = vector.broadcast %cst_172 : f32 to vector<8x1xf32>
    %381 = arith.cmpf oge, %23, %380 : vector<8x1xf32>
    %cst_173 = arith.constant 8.000000e+00 : f32
    %382 = vector.broadcast %cst_173 : f32 to vector<8x1xf32>
    %383 = arith.cmpf olt, %23, %382 : vector<8x1xf32>
    %384 = arith.andi %381, %383 : vector<8x1xi1>
    %cst_174 = arith.constant 9.765625E-4 : f32
    %385 = vector.broadcast %cst_174 : f32 to vector<1x1xf32>
    %386 = arith.mulf %376, %385 : vector<1x1xf32>
    %387 = vector.shape_cast %386 : vector<1x1xf32> to vector<1x1xf32>
    %388 = vector.broadcast %387 : vector<1x1xf32> to vector<8x1xf32>
    %389 = arith.select %384, %388, %368 : vector<8x1xi1>, vector<8x1xf32>
    %cst_175 = arith.constant 9.765625E-4 : f32
    %390 = vector.broadcast %cst_175 : f32 to vector<1x1xf32>
    %391 = arith.mulf %379, %390 : vector<1x1xf32>
    %392 = vector.shape_cast %391 : vector<1x1xf32> to vector<1x1xf32>
    %393 = vector.broadcast %392 : vector<1x1xf32> to vector<8x1xf32>
    %394 = arith.select %384, %393, %373 : vector<8x1xi1>, vector<8x1xf32>
    %395 = arith.mulf %389, %389 : vector<8x1xf32>
    %396 = arith.subf %394, %395 : vector<8x1xf32>
    %cst_176 = arith.constant 0.000000e+00 : f32
    %397 = vector.broadcast %cst_176 : f32 to vector<8x1xf32>
    %398 = arith.maximumf %396, %397 : vector<8x1xf32>
    %cst_177 = arith.constant 9.99999974E-6 : f32
    %399 = vector.broadcast %cst_177 : f32 to vector<8x1xf32>
    %400 = arith.addf %398, %399 : vector<8x1xf32>
    %401 = math.rsqrt %400 : vector<8x1xf32>
    %402 = arith.mulf %401, %5 : vector<8x1xf32>
    %403 = vector.broadcast %389 : vector<8x1xf32> to vector<8x384xf32>
    %404 = arith.subf %342, %403 : vector<8x384xf32>
    %405 = vector.broadcast %402 : vector<8x1xf32> to vector<8x384xf32>
    %406 = arith.mulf %404, %405 : vector<8x384xf32>
    %407 = vector.broadcast %6 : vector<8x1xf32> to vector<8x384xf32>
    %408 = arith.addf %406, %407 : vector<8x384xf32>
    %c1_178 = arith.constant 1 : index
    %c0_179 = arith.constant 0 : index
    %c0_180 = arith.constant 0 : index
    %409 = vector.load %arg5[%c1_178, %c0_179, %c0_180] : memref<2x8x384xf32, #tpu.memory_space<vmem>>, vector<1x8x384xf32>
    %410 = vector.shape_cast %409 : vector<1x8x384xf32> to vector<8x384xf32>
    %411 = vector.shape_cast %408 : vector<8x384xf32> to vector<1x8x384xf32>
    tpu.vector_store %arg5[%c1_178, %c0_179, %c0_180], %411 {strides = array<i32>} : memref<2x8x384xf32, #tpu.memory_space<vmem>>, vector<1x8x384xf32>,
    return
  }
  func.func @transform_0(%arg0: i32) -> (i32, i32, i32) {
    %c0_i32 = arith.constant 0 : i32
    %c0_i32_0 = arith.constant 0 : i32
    %c0_i32_1 = arith.constant 0 : i32
    return %arg0, %c0_i32, %c0_i32_0 : i32, i32, i32
  }
  func.func @transform_1(%arg0: i32) -> (i32, i32) {
    %c0_i32 = arith.constant 0 : i32
    %c0_i32_0 = arith.constant 0 : i32
    %c0_i32_1 = arith.constant 0 : i32
    return %c0_i32, %c0_i32_0 : i32, i32
  }
  func.func @transform_2(%arg0: i32) -> (i32, i32) {
    %c0_i32 = arith.constant 0 : i32
    %c0_i32_0 = arith.constant 0 : i32
    %c0_i32_1 = arith.constant 0 : i32
    return %c0_i32, %c0_i32_0 : i32, i32
  }
  func.func @transform_3(%arg0: i32) -> (i32, i32) {
    %c0_i32 = arith.constant 0 : i32
    %c0_i32_0 = arith.constant 0 : i32
    %c0_i32_1 = arith.constant 0 : i32
    return %c0_i32, %c0_i32_0 : i32, i32
  }
  func.func @transform_4(%arg0: i32) -> (i32, i32, i32) {
    %c0_i32 = arith.constant 0 : i32
    %c0_i32_0 = arith.constant 0 : i32
    %c0_i32_1 = arith.constant 0 : i32
    return %arg0, %c0_i32, %c0_i32_0 : i32, i32, i32
  }
}

</mosaic_0001>

<bundles_post_ra>
// kernel: tpu_custom_call.1
= control target key start
LH: loop header
LB: loop body
LE: loop exit
PB: predicated region body
PF: predicated region fallthrough
CT: control target
= control target key end

     0   :  { %9 = vsyncpa [#allocation6], 0  ;;  %s2879_s0 = inlined_call_operand.hbm [shape: f32[2,4,422], index: 0, kind: input, shape index: {}]   ;;  %s2880_s1 = inlined_call_operand.hbm [shape: f32[8,36], index: 1, kind: input, shape index: {}]   ;;  %s2881_s2 = inlined_call_operand.hbm [shape: f32[8,72], index: 2, kind: input, shape index: {}]   ;;  %s2882_s3 = inlined_call_operand.hbm [shape: f32[8,6], index: 3, kind: input, shape index: {}]   ;;  %s2883_s4 = inlined_call_operand.hbm [shape: f32[2,8,384], index: 4, kind: output, shape index: {}]  }
   0x1   :  { %10 = vsyncpa [#allocation9], 0 }
   0x2   :  { %11 = vsyncpa [#allocation12], 0 }
   0x3   :  { %12 = vsyncpa [#allocation7], 0  ;;  %s2065_s15 = smov [#allocation8]   ;;  %s2066_s17 = smov [#allocation5]  }
   0x4   :  { %s31_s16 = sshll.u32 %s2065_s15, 4  ;;  %s18_s18 = sshll.u32 %s2066_s17, 4  ;;  %s32_s16 = int_to_ptr.vmem [resolvable:$true] %s31_s16  ;;  %s19_s18 = int_to_ptr.vmem [resolvable:$true] %s18_s18 }
   0x5   :  { %s1965_s19 = scalar_lea.vmem %s32_s16, 128  ;;  %p1970_p1 = scmp.lt.s32.totalorder %s32_s16, %s32_s16 }
   0x6   :  { %p1966_p0 = scmp.ne.s32.totalorder %s32_s16, %s1965_s19  ;;  %p1971_p2 = scmp.lt.s32.totalorder %s1965_s19, %s1965_s19 }
   0x8   :  { %p1972_p3 = por %p1971_p2, %p1970_p1 }
   0xa   :  { %p1973_p4 = pnand %p1972_p3, %p1966_p0 }
   0xc   :  { %1976 = shalt.err (!%p1973_p4)
}
   0xd   :  { %34 = dma.hbm_to_vmem [thread:$0]  %s2880_s1, 128, %s32_s16, [#allocation9]  }
   0xe   :  { %s1985_s22 = scalar_lea.vmem %s19_s18, 512  ;;  %p1990_p6 = scmp.lt.s32.totalorder %s19_s18, %s19_s18 }
   0xf   :  { %p1986_p5 = scmp.ne.s32.totalorder %s19_s18, %s1985_s22  ;;  %p1991_p7 = scmp.lt.s32.totalorder %s1985_s22, %s1985_s22 }
  0x11   :  { %p1992_p8 = por %p1991_p7, %p1990_p6 }
  0x13   :  { %p1993_p9 = pnand %p1992_p8, %p1986_p5 }
  0x15   :  { %1996 = shalt.err (!%p1993_p9)
}
  0x16   :  { %s2067_s23 = smov 256   ;;  %s2068_s24 = smov 16  }
  0x17   :  { %24 = dma.hbm_to_vmem [thread:$0]  %s2879_s0, 512, %s19_s18, [#allocation6], %s2067_s23, %s2067_s23, %s2068_s24  }
  0x18   :  { %s2069_s27 = smov [#allocation10]   ;;  %s2070_s29 = smov [#allocation11]  }
  0x19   :  { %s41_s28 = sshll.u32 %s2069_s27, 4  ;;  %s51_s30 = sshll.u32 %s2070_s29, 4  ;;  %s42_s28 = int_to_ptr.vmem [resolvable:$true] %s41_s28  ;;  %s52_s30 = int_to_ptr.vmem [resolvable:$true] %s51_s30 }
  0x1a   :  { %s2005_s1 = scalar_lea.vmem %s42_s28, 128  ;;  %p2010_p11 = scmp.lt.s32.totalorder %s42_s28, %s42_s28 }
  0x1b   :  { %p2006_p10 = scmp.ne.s32.totalorder %s42_s28, %s2005_s1  ;;  %p2011_p12 = scmp.lt.s32.totalorder %s2005_s1, %s2005_s1 }
  0x1d   :  { %p2012_p13 = por %p2011_p12, %p2010_p11 }
  0x1f   :  { %p2013_p0 = pnand %p2012_p13, %p2006_p10 }
  0x21   :  { %2016 = shalt.err (!%p2013_p0)
}
  0x22   :  { %44 = dma.hbm_to_vmem [thread:$0]  %s2881_s2, 128, %s42_s28, [#allocation9]  }
  0x23   :  { %s2025_s7 = scalar_lea.vmem %s52_s30, 128  ;;  %p2030_p2 = scmp.lt.s32.totalorder %s52_s30, %s52_s30 }
  0x24   :  { %p2026_p1 = scmp.ne.s32.totalorder %s52_s30, %s2025_s7  ;;  %p2031_p3 = scmp.lt.s32.totalorder %s2025_s7, %s2025_s7 }
  0x26   :  { %p2032_p4 = por %p2031_p3, %p2030_p2 }
  0x28   :  { %p2033_p5 = pnand %p2032_p4, %p2026_p1 }
  0x2a   :  { %2036 = shalt.err (!%p2033_p5)
}
  0x2b   :  { %54 = dma.hbm_to_vmem [thread:$0]  %s2882_s3, 128, %s52_s30, [#allocation12]  }
  0x2c   :  { %2057 = dma.done.wait [#allocation6], 512  }
  0x2d   :  { %2058 = vsyncadd [#allocation6], 4294966784 }
  0x2e   :  { %2059 = dma.done.wait [#allocation9], 256  }
  0x2f   :  { %2060 = vsyncadd [#allocation9], 4294967040 }
  0x30   :  { %2061 = dma.done.wait [#allocation12], 128  }
  0x31   :  { %2062 = vsyncadd [#allocation12], 4294967168  ;;  %v109_v0 = vld [vmem:[#allocation5 + $0x8] sm:$0xff]  ;;  %v108_v1 = vld [vmem:[#allocation5] sm:$0xff]  ;;  %s2071_s2 = smov 90   ;;  %s2072_s9 = smov 92  }
  0x32   :  { %250 = vrot.lane.b32.xlu0 %v109_v0, %s2071_s2  ;;  %116 = vst [vmem:[#allocation2 + $0x58] sm:$0xf] %v109_v0  ;;  %246 = vrot.lane.b32.xlu1 %v108_v1, %s2071_s2  ;;  %114 = vst [vmem:[#allocation2 + $0x30] sm:$0xf] %v108_v1  ;;  %v112_v2 = vcombine.high %v108_v1, %v108_v1  ;;  %s2073_s3 = smov 91   ;;  %v118_v3 = vcombine.low %v109_v0, %v109_v0  ;;  %s2074_s10 = smov 109  }
  0x33   :  { %v117_v4 = vcombine.low %v108_v1, %v108_v1  ;;  %s2075_s11 = smov 108   ;;  %v2076_v5 = vmov 0.0   ;;  %v137_v6 = vcombine.high %v109_v0, %v109_v0  ;;  %s2077_s12 = smov 126   ;;  %vm2885_vm0 = vmmov 0   ;;  %v2164_v8 = vld [vmem:[#allocation11] sm:$0xff] }
  0x34   :  { %115 = vst [vmem:[#allocation2] sm:$0xf] %v112_v2  ;;  %1841 = vmatprep.subr.mxu1 %v2076_v5  ;;  %362 = vmatprep.mubr.f32.mxu0 %v2076_v5  ;;  %s2078_s13 = smov 110   ;;  %s2079_s14 = smov 127   ;;  %v2081_v7 = vmov 0   ;;  %vm218_vm1 = vcmask 752640  }
  0x35   :  { %1851 = vmatprep.mubr.msk.f32.mxu1 %vm2885_vm0, %v2076_v5  ;;  %1935 = vset.pattern.permute.xlu0 %v2081_v7  ;;  %vm254_vm2 = vcmask 736256   ;;  %vm236_vm3 = vcmask 744448   ;;  %vm2888_vm4 = vcmask 1043456   ;;  %vm2890_vm5 = vcmask 891904   ;;  %s2084_s15 = smov 19   ;;  %s2088_s16 = smov [#allocation13]  }
  0x36   :  { %214 = vrot.lane.b32.xlu0 %v109_v0, %s2072_s9  ;;  %230 = vrot.lane.b32.xlu1 %v108_v1, %s2073_s3  ;;  %vm200_vm6 = vcmask 883712   ;;  %vm2891_vm7 = vcmask 1031168   ;;  %vm164_vm8 = vcmask 900096   ;;  %vm2887_vm9 = vcmask 1039360   ;;  %s1781_s17 = sshll.u32 %s2088_s16, 4  ;;  %s1782_s17 = int_to_ptr.vmem [resolvable:$true] %s1781_s17 }
  0x37   :  { %vm2884_vm10 = vcmask 293888   ;;  %s2037_s18 = scalar_lea.vmem %s1782_s17, 768  ;;  %p2042_p7 = scmp.lt.s32.totalorder %s1782_s17, %s1782_s17 }
  0x38   :  { %p2038_p6 = scmp.ne.s32.totalorder %s1782_s17, %s2037_s18  ;;  %p2043_p8 = scmp.lt.s32.totalorder %s2037_s18, %s2037_s18 }
  0x3a   :  { %212 = vrot.lane.b32.xlu1 %v112_v2, %s2072_s9  ;;  %248 = vrot.lane.b32.xlu0 %v112_v2, %s2071_s2  ;;  %p2044_p9 = por %p2043_p8, %p2042_p7 }
  0x3c   :  { %p2045_p10 = pnand %p2044_p9, %p2038_p6 }
  0x3e   :  { %210 = vrot.lane.b32.xlu1 %v108_v1, %s2072_s9  ;;  %232 = vrot.lane.b32.xlu0 %v118_v3, %s2073_s3 }
  0x42   :  { %176 = vrot.lane.b32.xlu1 %v112_v2, %s2074_s10  ;;  %228 = vrot.lane.b32.xlu0 %v117_v4, %s2073_s3 }
  0x46   :  { %194 = vrot.lane.b32.xlu1 %v108_v1, %s2075_s11  ;;  %178 = vrot.lane.b32.xlu0 %v109_v0, %s2074_s10 }
  0x4a   :  { %174 = vrot.lane.b32.xlu1 %v108_v1, %s2074_s10  ;;  %196 = vrot.lane.b32.xlu0 %v118_v3, %s2075_s11 }
  0x4e   :  { %252 = vrot.lane.b32.xlu1 %v137_v6, %s2071_s2  ;;  %192 = vrot.lane.b32.xlu0 %v117_v4, %s2075_s11 }
  0x52   :  { %142 = vrot.lane.b32.xlu1 %v109_v0, %s2077_s12  ;;  %140 = vrot.lane.b32.xlu0 %v112_v2, %s2077_s12 }
  0x56   :  { %160 = vrot.lane.b32.xlu1 %v118_v3, %s2078_s13  ;;  %158 = vrot.lane.b32.xlu0 %v108_v1, %s2078_s13 }
  0x5a   :  { %156 = vrot.lane.b32.xlu1 %v117_v4, %s2078_s13  ;;  %138 = vrot.lane.b32.xlu0 %v108_v1, %s2077_s12 }
  0x5e   :  { %234 = vrot.lane.b32.xlu1 %v109_v0, %s2073_s3  ;;  %216 = vrot.lane.b32.xlu0 %v137_v6, %s2072_s9 }
  0x62   :  { %123 = vrot.lane.b32.xlu1 %v118_v3, %s2079_s14  ;;  %121 = vrot.lane.b32.xlu0 %v108_v1, %s2079_s14  ;;  %v2198_v3 = vld [vmem:[#allocation5 + $0x10] sm:$0xff] }
  0x63   :  { %v2203_v7 = vcombine.high %v2198_v3, %v2198_v3 }
  0x66   :  { %180 = vrot.lane.b32.xlu1 %v137_v6, %s2074_s10  ;;  %119 = vrot.lane.b32.xlu0 %v117_v4, %s2079_s14 }
  0x6a   :  { %144 = vrot.lane.b32.xlu1 %v137_v6, %s2077_s12  ;;  %198 = vrot.lane.b32.xlu0 %v109_v0, %s2075_s11 }
  0x6e   :  { %125 = vrot.lane.b32.xlu1 %v109_v0, %s2079_s14  ;;  %162 = vrot.lane.b32.xlu0 %v109_v0, %s2078_s13 }
  0x72   :  { %281 = vperm.xlu0 %1935, %v2164_v8  }
  0xa4   :  { %v251_v9 = vpop.permute.xlu0 %250  ;;  %v247_v10 = vpop.permute.xlu1 %246 }
  0xa8   :  { %v2167_v11 = vpop.permute.xlu0 %214  ;;  %v231_v12 = vpop.permute.xlu1 %230 }
  0xac   :  { %v213_v13 = vpop.permute.xlu1 %212  ;;  %v249_v14 = vpop.permute.xlu0 %248 }
  0xad   :  { %v220_v15 = vsel %vm218_vm1, %v213_v13, %v2167_v11  ;;  %v255_v16 = vsel %vm254_vm2, %v247_v10, %v249_v14  ;;  %v256_v17 = vsel %vm254_vm2, %v249_v14, %v251_v9  ;;  %v2209_v14 = vld [vmem:[#allocation8] sm:$0xff] }
  0xae   :  { %226 = vst [vmem:[#allocation2 + $0x10] sm:$0xf] %v220_v15  ;;  %261 = vst [vmem:[#allocation2 + $0x60] sm:$0xf] %v255_v16 }
  0xaf   :  { %262 = vst [vmem:[#allocation2 + $0x70] sm:$0xf] %v256_v17 }
  0xb0   :  { %v211_v18 = vpop.permute.xlu1 %210  ;;  %v233_v19 = vpop.permute.xlu0 %232 }
  0xb1   :  { %v219_v20 = vsel %vm218_vm1, %v211_v18, %v213_v13  ;;  %v238_v21 = vsel %vm236_vm3, %v231_v12, %v233_v19 }
  0xb2   :  { %225 = vst [vmem:[#allocation2 + $0x20] sm:$0xf] %v219_v20  ;;  %244 = vst [vmem:[#allocation2 + $0x10] sm:$0xf0] %v238_v21  ;;  %v2218_v21 = vld [vmem:[#allocation5 + $0x18] sm:$0xff] }
  0xb4   :  { %v177_v22 = vpop.permute.xlu1 %176  ;;  %v229_v23 = vpop.permute.xlu0 %228 }
  0xb5   :  { %v237_v24 = vsel %vm236_vm3, %v229_v23, %v231_v12  ;;  %v276_v26 = vld [vmem:[#allocation2 + $0x60] sm:$0xf] }
  0xb6   :  { %v277_v25 = vld [vmem:[#allocation2 + $0x70] sm:$0xf]  ;;  %243 = vst [vmem:[#allocation2 + $0x20] sm:$0xf0] %v237_v24 }
  0xb7   :  { %1795 = vmatprep.subr.msk.mxu0 %vm2888_vm4, %v277_v25 }
  0xb8   :  { %1796 = vmatpush1.msk.msra.mxu0 %vm2888_vm4, %v276_v26  ;;  %v195_v27 = vpop.permute.xlu1 %194  ;;  %v179_v28 = vpop.permute.xlu0 %178 }
  0xb9   :  { %v184_v29 = vsel %vm2890_vm5, %v177_v22, %v179_v28  ;;  %v274_v30 = vld [vmem:[#allocation2 + $0x10] sm:$0xff] }
  0xba   :  { %190 = vst [vmem:[#allocation2 + $0x48] sm:$0xf] %v184_v29  ;;  %322 = vmatprep.subr.mxu0 %v274_v30 }
  0xbc   :  { %v175_v31 = vpop.permute.xlu1 %174  ;;  %v2179_v32 = vpop.permute.xlu0 %196 }
  0xbd   :  { %v183_v33 = vsel %vm2890_vm5, %v175_v31, %v177_v22  ;;  %v202_v34 = vsel %vm200_vm6, %v195_v27, %v2179_v32  ;;  %v273_v35 = vld [vmem:[#allocation2 + $0x20] sm:$0xff]  ;;  %v70_v22 = vlaneseq }
  0xbe   :  { %189 = vst [vmem:[#allocation2 + $0x8] sm:$0xf] %v183_v33  ;;  %208 = vst [vmem:[#allocation2 + $0x48] sm:$0xf0] %v202_v34  ;;  %323 = vmatpush1.msra.mxu0 %v273_v35 }
  0xbf   :  { %v71_v23 = vand.u32 127, %v70_v22 }
  0xc0   :  { %v253_v36 = vpop.permute.xlu1 %252  ;;  %v193_v37 = vpop.permute.xlu0 %192 }
  0xc1   :  { %v257_v38 = vsel %vm254_vm2, %v251_v9, %v253_v36  ;;  %v201_v39 = vsel %vm200_vm6, %v193_v37, %v195_v27  ;;  %v72_v24 = vadd.s32 128, %v71_v23  ;;  %v74_v25 = vcvt.s32.f32 %v71_v23 }
  0xc2   :  { %263 = vst [vmem:[#allocation2 + $0x28] sm:$0xf] %v257_v38  ;;  %207 = vst [vmem:[#allocation2 + $0x8] sm:$0xf0] %v201_v39  ;;  %v73_v27 = vadd.s32 256, %v71_v23 }
  0xc3   :  { %v75_v26 = vcvt.s32.f32 %v72_v24  ;;  %vm93_vm12 = vcmp.lt.f32.partialorder %v74_v25, 288.0 }
  0xc4   :  { %v143_v40 = vpop.permute.xlu1 %142  ;;  %v141_v41 = vpop.permute.xlu0 %140  ;;  %v76_v30 = vcvt.s32.f32 %v73_v27 }
  0xc5   :  { %v148_v42 = vsel %vm2891_vm7, %v141_v41, %v143_v40  ;;  %v271_v43 = vld [vmem:[#allocation2 + $0x48] sm:$0xff]  ;;  %v79_v29 = vmul.f32 0.055555556, %v75_v26  ;;  %vm94_vm14 = vcmp.lt.f32.partialorder %v75_v26, 288.0 }
  0xc6   :  { %154 = vst [vmem:[#allocation2 + $0x50] sm:$0xf] %v148_v42  ;;  %324 = vmatprep.subr.mxu0 %v271_v43  ;;  %v80_v33 = vmul.f32 0.055555556, %v76_v30 }
  0xc8   :  { %v161_v44 = vpop.permute.xlu1 %160  ;;  %v159_v45 = vpop.permute.xlu0 %158  ;;  %v83_v36 = vfloor.f32 %v80_v33 }
  0xc9   :  { %v166_v46 = vsel %vm164_vm8, %v159_v45, %v161_v44  ;;  %v270_v47 = vld [vmem:[#allocation2 + $0x8] sm:$0xff] }
  0xca   :  { %v278_v48 = vld [vmem:[#allocation2 + $0x28] sm:$0xf]  ;;  %172 = vst [vmem:[#allocation2 + $0x50] sm:$0xf0] %v166_v46  ;;  %325 = vmatpush1.msra.mxu0 %v270_v47 }
  0xcb   :  { %1842 = vmatpush3.msk.msra.mxu1 %vm2888_vm4, %v278_v48 }
  0xcc   :  { %1843 = vmatprep.subr.mxu1 %v2076_v5  ;;  %v157_v49 = vpop.permute.xlu1 %156  ;;  %v139_v50 = vpop.permute.xlu0 %138 }
  0xcd   :  { %v165_v51 = vsel %vm164_vm8, %v157_v49, %v159_v45  ;;  %v147_v52 = vsel %vm2891_vm7, %v139_v50, %v141_v41  ;;  %v86_v41 = vmul.f32 18.0, %v83_v36  ;;  %v2087_v49 = vmov 5  }
  0xce   :  { %171 = vst [vmem:[#allocation2 + $0x18] sm:$0xf0] %v165_v51  ;;  %153 = vst [vmem:[#allocation2 + $0x18] sm:$0xf] %v147_v52 }
  0xcf   :  { %v89_v45 = vsub.f32 %v76_v30, %v86_v41 }
  0xd0   :  { %v235_v53 = vpop.permute.xlu1 %234  ;;  %v217_v54 = vpop.permute.xlu0 %216 }
  0xd1   :  { %v239_v55 = vsel %vm236_vm3, %v233_v19, %v235_v53  ;;  %v221_v56 = vsel %vm218_vm1, %v2167_v11, %v217_v54  ;;  %v268_v57 = vld [vmem:[#allocation2 + $0x50] sm:$0xff] }
  0xd2   :  { %245 = vst [vmem:[#allocation2 + $0x38] sm:$0xf0] %v239_v55  ;;  %227 = vst [vmem:[#allocation2 + $0x38] sm:$0xf] %v221_v56  ;;  %326 = vmatprep.subr.mxu0 %v268_v57 }
  0xd4   :  { %v124_v58 = vpop.permute.xlu1 %123  ;;  %v122_v59 = vpop.permute.xlu0 %121 }
  0xd5   :  { %v129_v60 = vsel %vm2887_vm9, %v122_v59, %v124_v58  ;;  %v267_v61 = vld [vmem:[#allocation2 + $0x18] sm:$0xff] }
  0xd6   :  { %135 = vst [vmem:[#allocation2] sm:$0xf0] %v129_v60  ;;  %327 = vmatpush1.msra.mxu0 %v267_v61 }
  0xd8   :  { %v181_v62 = vpop.permute.xlu1 %180  ;;  %v120_v63 = vpop.permute.xlu0 %119 }
  0xd9   :  { %v185_v0 = vsel %vm2890_vm5, %v179_v28, %v181_v62  ;;  %v128_v1 = vsel %vm2887_vm9, %v120_v63, %v122_v59  ;;  %v275_v2 = vld [vmem:[#allocation2 + $0x38] sm:$0xff]  ;;  %v78_v28 = vmul.f32 0.055555556, %v74_v25 }
  0xda   :  { %191 = vst [vmem:[#allocation2 + $0x40] sm:$0xf] %v185_v0  ;;  %134 = vst [vmem:[#allocation2 + $0x30] sm:$0xf0] %v128_v1  ;;  %1844 = vmatpush3.msra.mxu1 %v275_v2  ;;  %v2082_v1 = vmov 1   ;;  %v2083_v2 = vmov 2  }
  0xdb   :  { %1845 = vmatprep.subr.mxu1 %v2076_v5  ;;  %v81_v31 = vfloor.f32 %v78_v28  ;;  %1936 = vset.pattern.permute.xlu1 %v2082_v1 }
  0xdc   :  { %v145_v4 = vpop.permute.xlu1 %144  ;;  %v199_v6 = vpop.permute.xlu0 %198  ;;  %1937 = vset.pattern.permute.xlu0 %v2083_v2 }
  0xdd   :  { %v149_v9 = vsel %vm2891_vm7, %v143_v40, %v145_v4  ;;  %v203_v10 = vsel %vm200_vm6, %v2179_v32, %v199_v6  ;;  %v265_v11 = vld [vmem:[#allocation2] sm:$0xff]  ;;  %v82_v32 = vfloor.f32 %v79_v29  ;;  %v84_v34 = vmul.f32 18.0, %v81_v31 }
  0xde   :  { %155 = vst [vmem:[#allocation2 + $0x68] sm:$0xf] %v149_v9  ;;  %209 = vst [vmem:[#allocation2 + $0x40] sm:$0xf0] %v203_v10  ;;  %328 = vmatprep.subr.mxu0 %v265_v11  ;;  %v2294_v6 = vcombine.high %v2218_v21, %v2218_v21  ;;  %v2302_v9 = vcombine.low %v2218_v21, %v2218_v21  ;;  %v100_v11 = vshrl.u32 %v70_v22, 7 }
  0xdf   :  { %973 = vst [vmem:[#allocation2] sm:$0xf] %v2203_v7  ;;  %v85_v35 = vmul.f32 18.0, %v82_v32  ;;  %v87_v38 = vsub.f32 %v74_v25, %v84_v34 }
  0xe0   :  { %v126_v12 = vpop.permute.xlu1 %125  ;;  %v163_v13 = vpop.permute.xlu0 %162  ;;  %v101_v25 = vcvt.s32.f32 %v100_v11 }
  0xe1   :  { %v130_v15 = vsel %vm2887_vm9, %v124_v58, %v126_v12  ;;  %v167_v16 = vsel %vm164_vm8, %v161_v44, %v163_v13  ;;  %v264_v17 = vld [vmem:[#allocation2 + $0x30] sm:$0xff]  ;;  %v88_v39 = vsub.f32 %v75_v26, %v85_v35  ;;  %vm90_vm11 = vcmp.lt.f32.partialorder %v87_v38, 16.0 }
  0xe2   :  { %136 = vst [vmem:[#allocation2 + $0x58] sm:$0xf0] %v130_v15  ;;  %173 = vst [vmem:[#allocation2 + $0x68] sm:$0xf0] %v167_v16  ;;  %329 = vmatpush1.msra.mxu0 %v264_v17  ;;  %vm95_vm9 = vcmp.lt.f32.partialorder %v76_v30, 288.0 }
  0xe3   :  { %972 = vst [vmem:[#allocation2 + $0x30] sm:$0xf] %v2198_v3  ;;  %1797 = vmatmul.mubr.msk.f32.vlgmr.msra.gmra.mxu0 %vm2884_vm10, %v2209_v14  ;;  %vm91_vm13 = vcmp.lt.f32.partialorder %v88_v39, 16.0  ;;  %vm2236_vm15 = vmand %vm90_vm11, %vm93_vm12  ;;  %vm477_vm12 = vcmp.lt.f32.partialorder %v101_v25, 4.0 }
  0xe4   :  { %802 = vmatprep.mubr.f32.mxu0 %v2076_v5 }
  0xe5   :  { %v272_v18 = vld [vmem:[#allocation2 + $0x40] sm:$0xff] }
  0xe6   :  { %1846 = vmatpush3.msra.mxu1 %v272_v18 }
  0xe7   :  { %1847 = vmatprep.subr.mxu1 %v2076_v5 }
  0xe9   :  { %v269_v19 = vld [vmem:[#allocation2 + $0x68] sm:$0xff]  ;;  %v266_v20 = vld [vmem:[#allocation2 + $0x58] sm:$0xff] }
  0xea   :  { %1848 = vmatpush3.msra.mxu1 %v269_v19  ;;  %974 = vst [vmem:[#allocation2 + $0x58] sm:$0xf] %v2218_v21 }
  0xeb   :  { %1849 = vmatprep.subr.mxu1 %v2076_v5 }
  0xec   :  { %1850 = vmatpush3.msra.mxu1 %v266_v20 }
  0xed   :  { %1852 = vmatmul.mubr.msk.f32.vlgmr.msra.gmra.mxu1 %vm2884_vm10, %v2209_v14  ;;  %1854 = vmatprep.subr.mxu1 %v2076_v5  ;;  %v2228_v37 = vpop.permute.xlu0 %281  ;;  %vm2242_vm10 = vmand %vm91_vm13, %vm94_vm14  ;;  %vm503_vm13 = vcmp.ge.f32.partialorder %v101_v25, 4.0  ;;  %vm504_vm14 = vcmp.lt.f32.partialorder %v101_v25, 8.0 }
  0xee   :  { %1872 = vmatprep.mubr.msk.f32.mxu1 %vm2885_vm0, %v2076_v5  ;;  %vm92_vm0 = vcmp.lt.f32.partialorder %v89_v45, 16.0 }
  0xef   :  { %vm2257_vm11 = vmand %vm92_vm0, %vm95_vm9  ;;  %vm106_vm0 = vcmask 310272   ;;  %vm476_vm9 = vcmp.ge.f32.partialorder %v101_v25, 0.0 }
  0xf0   :  { %107 = vst.msk [vmem:[#allocation4 + $0x18] sm:$0xff] %vm106_vm0, %v2076_v5  ;;  %vm2319_vm0 = vmand %vm476_vm9, %vm477_vm12  ;;  %vm102_vm9 = vcmask 154624   ;;  %vm104_vm12 = vcmask 1047960  }
  0xf1   :  { %103 = vst.msk [vmem:[#allocation4] sm:$0xff] %vm102_vm9, %v2076_v5 }
  0xf2   :  { %105 = vst.msk [vmem:[#allocation4 + $0x10] sm:$0xff] %vm104_vm12, %v2076_v5  ;;  %vm2903_vm12 = vcmask 1039360  }
  0xf7   :  { %v2268_v4 = vld [vmem:[#allocation4 + $0x18] sm:$0xff] }
 0x1a3   :  { %v364_v40 = vpop.f32.mrf.mxu0 }
 0x1a4   :  { %v2231_v42 = vadd.f32 %v364_v40, %v2228_v37 }
 0x1a5   :  { %v366_v43 = vpop.f32.mrf.mxu0 }
 0x1a6   :  { %v2234_v44 = vadd.f32 %v366_v43, %v2228_v37  ;;  %v439_v47 = vmax.f32 %v2231_v42, 0.0 }
 0x1a8   :  { %v440_v48 = vmax.f32 %v2234_v44, 0.0  ;;  %v448_v50 = vsel %vm2236_vm15, %v439_v47, 0.0 }
 0x1a9   :  { %v451_v56 = vmul.f32 %v448_v50, %v448_v50 }
 0x1aa   :  { %v449_v51 = vsel %vm2242_vm10, %v440_v48, 0.0 }
 0x1ab   :  { %v452_v57 = vmul.f32 %v449_v51, %v449_v51  ;;  %v454_v59 = vadd.f32 %v449_v51, %v448_v50 }
 0x1ad   :  { %v435_v52 = vpop.f32.mrf.mxu1  ;;  %v458_v63 = vadd.f32 %v452_v57, %v451_v56 }
 0x1ae   :  { %v2255_v53 = vadd.f32 %v435_v52, %v2228_v37 }
 0x1af   :  { %v1853_v54 = vpop.f32.mrf.mxu1 }
 0x1b0   :  { %v441_v58 = vmax.f32 %v2255_v53, 0.0 }
 0x1b2   :  { %v450_v60 = vsel %vm2257_vm11, %v441_v58, 0.0 }
 0x1b3   :  { %v455_v61 = vadd.f32 %v454_v59, %v450_v60  ;;  %v453_v62 = vmul.f32 %v450_v60, %v450_v60 }
 0x1b5   :  { %456 = vadd.xlane.f32.xlu1 %v455_v61  ;;  %v459_v0 = vadd.f32 %v458_v63, %v453_v62 }
 0x1b7   :  { %460 = vadd.xlane.f32.xlu0 %v459_v0 }
 0x1cd   :  { %528 = vperm.xlu0 %1937, %v2164_v8  }
 0x1d1   :  { %1938 = vset.pattern.permute.xlu0 %v2082_v1 }
 0x1d2   :  { %692 = vrot.lane.b32.xlu0 %v2268_v4, %s2071_s2 }
 0x1d6   :  { %675 = vrot.lane.b32.xlu0 %v2268_v4, %s2073_s3 }
 0x1da   :  { %658 = vrot.lane.b32.xlu0 %v2268_v4, %s2072_s9 }
 0x1de   :  { %1101 = vrot.lane.b32.xlu0 %v2218_v21, %s2071_s2 }
 0x1e2   :  { %641 = vrot.lane.b32.xlu0 %v2268_v4, %s2075_s11 }
 0x1e6   :  { %1065 = vrot.lane.b32.xlu0 %v2203_v7, %s2072_s9 }
 0x1ea   :  { %1082 = vrot.lane.b32.xlu0 %v2198_v3, %s2073_s3 }
 0x1ee   :  { %1063 = vrot.lane.b32.xlu0 %v2198_v3, %s2072_s9 }
 0x1f2   :  { %1031 = vrot.lane.b32.xlu0 %v2203_v7, %s2074_s10 }
 0x1f6   :  { %1048 = vrot.lane.b32.xlu0 %v2198_v3, %s2075_s11 }
 0x1fa   :  { %1029 = vrot.lane.b32.xlu0 %v2198_v3, %s2074_s10 }
 0x1fe   :  { %1103 = vrot.lane.b32.xlu0 %v2294_v6, %s2071_s2 }
 0x202   :  { %999 = vrot.lane.b32.xlu0 %v2218_v21, %s2077_s12 }
 0x206   :  { %1016 = vrot.lane.b32.xlu0 %v2302_v9, %s2078_s13 }
 0x20a   :  { %995 = vrot.lane.b32.xlu0 %v2198_v3, %s2077_s12 }
 0x20e   :  { %1069 = vrot.lane.b32.xlu0 %v2294_v6, %s2072_s9 }
 0x212   :  { %979 = vrot.lane.b32.xlu0 %v2198_v3, %s2079_s14 }
 0x216   :  { %573 = vrot.lane.b32.xlu0 %v2268_v4, %s2079_s14 }
 0x23e   :  { %v457_v10 = vpop.xlane.xlu1 %456 }
 0x23f   :  { %v462_v12 = vsel %vm2888_vm4, %v457_v10, 0.0  ;;  %v484_v13 = vrot.slane %v457_v10, 4 }
 0x240   :  { %v463_v15 = vrot.slane %v462_v12, 4  ;;  %v461_v16 = vpop.xlane.xlu0 %460 }
 0x241   :  { %v486_v17 = vsel %vm2888_vm4, %v484_v13, 0.0  ;;  %v469_v18 = vsel %vm2888_vm4, %v461_v16, 0.0  ;;  %v494_v19 = vrot.slane %v461_v16, 4 }
 0x242   :  { %v464_v20 = vadd.f32 %v463_v15, %v462_v12  ;;  %v487_v23 = vrot.slane %v486_v17, 4  ;;  %v470_v24 = vrot.slane %v469_v18, 4 }
 0x243   :  { %v496_v26 = vsel %vm2888_vm4, %v494_v19, 0.0  ;;  %vm2323_vm4 = vmand %vm503_vm13, %vm504_vm14  ;;  %vm551_vm13 = vcmask 1047704   ;;  %vm2889_vm14 = vcmask 416768  }
 0x244   :  { %v465_v27 = vrot.slane %v464_v20, 2  ;;  %v488_v28 = vadd.f32 %v487_v23, %v486_v17  ;;  %v471_v29 = vadd.f32 %v470_v24, %v469_v18  ;;  %v497_v22 = vrot.slane %v496_v26, 4 }
 0x246   :  { %v466_v30 = vadd.f32 %v465_v27, %v464_v20  ;;  %v489_v31 = vrot.slane %v488_v28, 2  ;;  %v472_v32 = vrot.slane %v471_v29, 2  ;;  %v498_v33 = vadd.f32 %v497_v22, %v496_v26 }
 0x248   :  { %v467_v34 = vrot.slane %v466_v30, 1  ;;  %v490_v35 = vadd.f32 %v489_v31, %v488_v28  ;;  %v473_v36 = vadd.f32 %v472_v32, %v471_v29  ;;  %v499_v38 = vrot.slane %v498_v33, 2  ;;  %v2340_v16 = vpop.permute.xlu0 %528 }
 0x24a   :  { %v468_v39 = vadd.f32 %v467_v34, %v466_v30  ;;  %v491_v40 = vrot.slane %v490_v35, 1  ;;  %v474_v41 = vrot.slane %v473_v36, 1  ;;  %v500_v43 = vadd.f32 %v499_v38, %v498_v33 }
 0x24c   :  { %v479_v50 = vmul.f32 0.0009765625, %v468_v39  ;;  %v492_v51 = vadd.f32 %v491_v40, %v490_v35  ;;  %v475_v52 = vadd.f32 %v474_v41, %v473_v36  ;;  %v501_v54 = vrot.slane %v500_v43, 1  ;;  %v2344_v17 = vpop.permute.xlu0 %692 }
 0x24e   :  { %v480_v57 = vsel %vm2319_vm0, %v479_v50, 0.0  ;;  %v506_v59 = vmul.f32 0.0009765625, %v492_v51  ;;  %v481_v60 = vmul.f32 0.0009765625, %v475_v52  ;;  %v502_v61 = vadd.f32 %v501_v54, %v500_v43 }
 0x250   :  { %v507_v62 = vsel %vm2323_vm4, %v506_v59, %v480_v57  ;;  %v482_v63 = vsel %vm2319_vm0, %v481_v60, 0.0  ;;  %v508_v0 = vmul.f32 0.0009765625, %v502_v61  ;;  %v2348_v18 = vpop.permute.xlu0 %675 }
 0x251   :  { %v510_v1 = vmul.f32 %v507_v62, %v507_v62  ;;  %v516_v34 = vsub.f32 %v439_v47, %v507_v62  ;;  %v518_v40 = vsub.f32 %v441_v58, %v507_v62 }
 0x252   :  { %v509_v2 = vsel %vm2323_vm4, %v508_v0, %v482_v63 }
 0x253   :  { %v511_v10 = vsub.f32 %v509_v2, %v510_v1 }
 0x254   :  { %v2356_v19 = vpop.permute.xlu0 %658 }
 0x255   :  { %v512_v11 = vmax.f32 %v511_v10, 0.0 }
 0x257   :  { %v513_v12 = vadd.f32 1e-05, %v512_v11 }
 0x258   :  { %v1102_v20 = vpop.permute.xlu0 %1101 }
 0x259   :  { %1948 = vrsqrt.f32 %v513_v12 }
 0x25c   :  { %v2362_v23 = vpop.permute.xlu0 %641 }
 0x260   :  { %v1066_v24 = vpop.permute.xlu0 %1065 }
 0x264   :  { %v1083_v25 = vpop.permute.xlu0 %1082 }
 0x266   :  { %v1949_v13 = vpop.eup %1948 }
 0x267   :  { %v515_v15 = vmul.f32 %v1949_v13, %v2164_v8  ;;  %v2354_v8 = vcombine.low %v2198_v3, %v2198_v3 }
 0x268   :  { %v1064_v26 = vpop.permute.xlu0 %1063 }
 0x269   :  { %521 = vperm.xlu1 %1936, %v515_v15   ;;  %v1071_v27 = vsel %vm218_vm1, %v1064_v26, %v1066_v24 }
 0x26a   :  { %1077 = vst [vmem:[#allocation2 + $0x20] sm:$0xf] %v1071_v27 }
 0x26c   :  { %v1032_v28 = vpop.permute.xlu0 %1031 }
 0x26d   :  { %1099 = vrot.lane.b32.xlu1 %v2203_v7, %s2071_s2 }
 0x270   :  { %v1049_v29 = vpop.permute.xlu0 %1048 }
 0x271   :  { %1097 = vrot.lane.b32.xlu1 %v2198_v3, %s2071_s2 }
 0x274   :  { %v1030_v22 = vpop.permute.xlu0 %1029 }
 0x275   :  { %1067 = vrot.lane.b32.xlu1 %v2218_v21, %s2072_s9  ;;  %v1037_v30 = vsel %vm2890_vm5, %v1030_v22, %v1032_v28 }
 0x276   :  { %1043 = vst [vmem:[#allocation2 + $0x8] sm:$0xf] %v1037_v30 }
 0x278   :  { %v1104_v31 = vpop.permute.xlu0 %1103 }
 0x279   :  { %1084 = vrot.lane.b32.xlu1 %v2302_v9, %s2073_s3  ;;  %v1107_v32 = vsel %vm254_vm2, %v1102_v20, %v1104_v31 }
 0x27a   :  { %1113 = vst [vmem:[#allocation2 + $0x28] sm:$0xf] %v1107_v32 }
 0x27c   :  { %v2379_v33 = vpop.permute.xlu0 %999 }
 0x27d   :  { %624 = vrot.lane.b32.xlu1 %v2268_v4, %s2074_s10 }
 0x281   :  { %1080 = vrot.lane.b32.xlu1 %v2354_v8, %s2073_s3 }
 0x285   :  { %1033 = vrot.lane.b32.xlu1 %v2218_v21, %s2074_s10 }
 0x289   :  { %1050 = vrot.lane.b32.xlu1 %v2302_v9, %s2075_s11 }
 0x28d   :  { %607 = vrot.lane.b32.xlu1 %v2268_v4, %s2078_s13 }
 0x291   :  { %1046 = vrot.lane.b32.xlu1 %v2354_v8, %s2075_s11 }
 0x295   :  { %997 = vrot.lane.b32.xlu1 %v2203_v7, %s2077_s12  ;;  %v2381_v7 = vpop.permute.xlu0 %1016 }
 0x299   :  { %1014 = vrot.lane.b32.xlu1 %v2198_v3, %s2078_s13  ;;  %v517_v3 = vsub.f32 %v440_v48, %v507_v62  ;;  %v996_v43 = vpop.permute.xlu0 %995 }
 0x29d   :  { %v1070_v52 = vpop.permute.xlu0 %1069 }
 0x2e4   :  { %v522_v35 = vpop.permute.xlu1 %521 }
 0x2e5   :  { %v524_v36 = vmul.f32 %v522_v35, %v516_v34  ;;  %v525_v38 = vmul.f32 %v522_v35, %v517_v3  ;;  %v526_v42 = vmul.f32 %v522_v35, %v518_v40 }
 0x2e7   :  { %v531_v39 = vadd.f32 %v2340_v16, %v524_v36  ;;  %v532_v51 = vadd.f32 %v2340_v16, %v525_v38  ;;  %v533_v53 = vadd.f32 %v2340_v16, %v526_v42  ;;  %v980_v38 = vpop.permute.xlu0 %979 }
 0x2e8   :  { %v1100_v41 = vpop.permute.xlu1 %1099 }
 0x2e9   :  { %v534_v50 = vsel %vm2236_vm15, %v531_v39, 0.0  ;;  %v1106_v47 = vsel %vm254_vm2, %v1100_v41, %v1102_v20  ;;  %v535_v48 = vsel %vm2242_vm10, %v532_v51, 0.0  ;;  %v536_v57 = vsel %vm2257_vm11, %v533_v53, 0.0 }
 0x2ea   :  { %540 = vrot.lane.b32.xlu1 %v534_v50, %s2084_s15  ;;  %1112 = vst [vmem:[#allocation2 + $0x70] sm:$0xf] %v1106_v47 }
 0x2ec   :  { %v1098_v44 = vpop.permute.xlu1 %1097 }
 0x2ed   :  { %v1105_v58 = vsel %vm254_vm2, %v1098_v44, %v1100_v41 }
 0x2ee   :  { %542 = vrot.lane.b32.xlu1 %v535_v48, %s2084_s15  ;;  %1111 = vst [vmem:[#allocation2 + $0x60] sm:$0xf] %v1105_v58 }
 0x2f0   :  { %v1068_v54 = vpop.permute.xlu1 %1067 }
 0x2f1   :  { %v1072_v59 = vsel %vm218_vm1, %v1066_v24, %v1068_v54  ;;  %v1073_v60 = vsel %vm218_vm1, %v1068_v54, %v1070_v52 }
 0x2f2   :  { %544 = vrot.lane.b32.xlu1 %v536_v57, %s2084_s15  ;;  %1078 = vst [vmem:[#allocation2 + $0x10] sm:$0xf] %v1072_v59  ;;  %1079 = vst [vmem:[#allocation2 + $0x38] sm:$0xf] %v1073_v60 }
 0x2f4   :  { %v1085_v61 = vpop.permute.xlu1 %1084 }
 0x2f5   :  { %v1089_v62 = vsel %vm236_vm3, %v1083_v25, %v1085_v61 }
 0x2f6   :  { %590 = vrot.lane.b32.xlu1 %v2268_v4, %s2077_s12  ;;  %1095 = vst [vmem:[#allocation2 + $0x10] sm:$0xf0] %v1089_v62 }
 0x2f8   :  { %v2409_v63 = vpop.permute.xlu1 %624 }
 0x2fa   :  { %1012 = vrot.lane.b32.xlu1 %v2354_v8, %s2078_s13 }
 0x2fc   :  { %v1081_v0 = vpop.permute.xlu1 %1080 }
 0x2fd   :  { %v1088_v1 = vsel %vm236_vm3, %v1081_v0, %v1083_v25 }
 0x2fe   :  { %1086 = vrot.lane.b32.xlu1 %v2218_v21, %s2073_s3  ;;  %1094 = vst [vmem:[#allocation2 + $0x20] sm:$0xf0] %v1088_v1 }
 0x300   :  { %v2416_v2 = vpop.permute.xlu1 %1033 }
 0x301   :  { %v1038_v10 = vsel %vm2890_vm5, %v1032_v28, %v2416_v2 }
 0x302   :  { %1044 = vst [vmem:[#allocation2 + $0x48] sm:$0xf] %v1038_v10  ;;  %981 = vrot.lane.b32.xlu1 %v2302_v9, %s2079_s14 }
 0x304   :  { %v2422_v11 = vpop.permute.xlu1 %1050 }
 0x305   :  { %v1055_v12 = vsel %vm200_vm6, %v1049_v29, %v2422_v11 }
 0x306   :  { %1061 = vst [vmem:[#allocation2 + $0x48] sm:$0xf0] %v1055_v12  ;;  %977 = vrot.lane.b32.xlu1 %v2354_v8, %s2079_s14 }
 0x308   :  { %v2428_v13 = vpop.permute.xlu1 %607 }
 0x30c   :  { %v1047_v15 = vpop.permute.xlu1 %1046 }
 0x30d   :  { %v1054_v20 = vsel %vm200_vm6, %v1047_v15, %v1049_v29 }
 0x30e   :  { %1060 = vst [vmem:[#allocation2 + $0x8] sm:$0xf0] %v1054_v20 }
 0x310   :  { %v998_v24 = vpop.permute.xlu1 %997 }
 0x311   :  { %v1003_v25 = vsel %vm2891_vm7, %v996_v43, %v998_v24  ;;  %v1004_v9 = vsel %vm2891_vm7, %v998_v24, %v2379_v33 }
 0x312   :  { %1009 = vst [vmem:[#allocation2 + $0x18] sm:$0xf] %v1003_v25  ;;  %1010 = vst [vmem:[#allocation2 + $0x50] sm:$0xf] %v1004_v9 }
 0x314   :  { %v1015_v26 = vpop.permute.xlu1 %1014 }
 0x315   :  { %v1021_v27 = vsel %vm164_vm8, %v1015_v26, %v2381_v7 }
 0x316   :  { %1027 = vst [vmem:[#allocation2 + $0x50] sm:$0xf0] %v1021_v27 }
 0x35c   :  { %v541_v8 = vpop.permute.xlu1 %540 }
 0x35d   :  { %552 = vst.msk [vmem:[#allocation4] sm:$0xff] %vm551_vm13, %v541_v8 }
 0x360   :  { %v543_v28 = vpop.permute.xlu1 %542 }
 0x361   :  { %v2472_v41 = vsel %vm102_vm9, %v541_v8, %v543_v28 }
 0x364   :  { %v545_v29 = vpop.permute.xlu1 %544  ;;  %v2437_v22 = vld [vmem:[#allocation4] sm:$0xff] }
 0x365   :  { %v547_v30 = vsel %vm102_vm9, %v543_v28, %v545_v29  ;;  %669 = vrot.lane.b32.xlu0 %v2437_v22, %s2073_s3  ;;  %686 = vrot.lane.b32.xlu1 %v2437_v22, %s2071_s2 }
 0x366   :  { %555 = vst.msk [vmem:[#allocation4 + $0x10] sm:$0xff] %vm2889_vm14, %v547_v30  ;;  %vm2904_vm14 = vmmov %vm2903_vm12 }
 0x368   :  { %v2445_v31 = vpop.permute.xlu1 %590 }
 0x369   :  { %584 = vrot.lane.b32.xlu0 %v2437_v22, %s2077_s12  ;;  %652 = vrot.lane.b32.xlu1 %v2437_v22, %s2072_s9 }
 0x36c   :  { %v1013_v32 = vpop.permute.xlu1 %1012 }
 0x36d   :  { %v1020_v34 = vsel %vm164_vm8, %v1013_v32, %v1015_v26  ;;  %567 = vrot.lane.b32.xlu0 %v2437_v22, %s2079_s14  ;;  %635 = vrot.lane.b32.xlu1 %v2437_v22, %s2075_s11  ;;  %v2456_v35 = vld [vmem:[#allocation4 + $0x10] sm:$0xff] }
 0x36e   :  { %1026 = vst [vmem:[#allocation2 + $0x18] sm:$0xf0] %v1020_v34 }
 0x370   :  { %v1087_v3 = vpop.permute.xlu1 %1086 }
 0x371   :  { %v1090_v36 = vsel %vm236_vm3, %v1085_v61, %v1087_v3  ;;  %618 = vrot.lane.b32.xlu1 %v2437_v22, %s2074_s10  ;;  %656 = vrot.lane.b32.xlu0 %v2456_v35, %s2072_s9 }
 0x372   :  { %1096 = vst [vmem:[#allocation2 + $0x38] sm:$0xf0] %v1090_v36 }
 0x374   :  { %v2463_v39 = vpop.permute.xlu1 %981 }
 0x375   :  { %601 = vrot.lane.b32.xlu1 %v2437_v22, %s2078_s13  ;;  %639 = vrot.lane.b32.xlu0 %v2456_v35, %s2075_s11  ;;  %v986_v40 = vsel %vm2903_vm12, %v980_v38, %v2463_v39 }
 0x376   :  { %992 = vst [vmem:[#allocation2] sm:$0xf0] %v986_v40 }
 0x378   :  { %v978_v43 = vpop.permute.xlu1 %977 }
 0x379   :  { %688 = vrot.lane.b32.xlu1 %v2472_v41, %s2071_s2  ;;  %622 = vrot.lane.b32.xlu0 %v2456_v35, %s2074_s10  ;;  %v985_v50 = vsel %vm2904_vm14, %v978_v43, %v980_v38  ;;  %vm2905_vm14 = vmmov %vm2903_vm12 }
 0x37a   :  { %991 = vst [vmem:[#allocation2 + $0x30] sm:$0xf0] %v985_v50 }
 0x37d   :  { %605 = vrot.lane.b32.xlu0 %v2456_v35, %s2078_s13  ;;  %690 = vrot.lane.b32.xlu1 %v2456_v35, %s2071_s2 }
 0x381   :  { %586 = vrot.lane.b32.xlu0 %v2472_v41, %s2077_s12  ;;  %671 = vrot.lane.b32.xlu1 %v2472_v41, %s2073_s3 }
 0x385   :  { %569 = vrot.lane.b32.xlu0 %v2472_v41, %s2079_s14  ;;  %673 = vrot.lane.b32.xlu1 %v2456_v35, %s2073_s3 }
 0x389   :  { %1035 = vrot.lane.b32.xlu0 %v2294_v6, %s2074_s10  ;;  %654 = vrot.lane.b32.xlu1 %v2472_v41, %s2072_s9 }
 0x38d   :  { %1001 = vrot.lane.b32.xlu0 %v2294_v6, %s2077_s12  ;;  %637 = vrot.lane.b32.xlu1 %v2472_v41, %s2075_s11  ;;  %v2513_v6 = vpop.permute.xlu0 %573 }
 0x391   :  { %983 = vrot.lane.b32.xlu0 %v2218_v21, %s2079_s14  ;;  %620 = vrot.lane.b32.xlu1 %v2472_v41, %s2074_s10 }
 0x395   :  { %603 = vrot.lane.b32.xlu1 %v2472_v41, %s2078_s13 }
 0x399   :  { %588 = vrot.lane.b32.xlu1 %v2456_v35, %s2077_s12 }
 0x39d   :  { %571 = vrot.lane.b32.xlu1 %v2456_v35, %s2079_s14 }
 0x3a1   :  { %1052 = vrot.lane.b32.xlu1 %v2218_v21, %s2075_s11 }
 0x3a5   :  { %1018 = vrot.lane.b32.xlu1 %v2218_v21, %s2078_s13 }
 0x3d7   :  { %v687_v51 = vpop.permute.xlu1 %686  ;;  %v670_v42 = vpop.permute.xlu0 %669 }
 0x3db   :  { %v653_v47 = vpop.permute.xlu1 %652  ;;  %v2515_v44 = vpop.permute.xlu0 %584 }
 0x3df   :  { %v636_v48 = vpop.permute.xlu1 %635  ;;  %v2517_v53 = vpop.permute.xlu0 %567 }
 0x3e3   :  { %v619_v58 = vpop.permute.xlu1 %618  ;;  %v657_v52 = vpop.permute.xlu0 %656 }
 0x3e4   :  { %v662_v9 = vsel %vm218_vm1, %v657_v52, %v2356_v19 }
 0x3e7   :  { %v602_v54 = vpop.permute.xlu1 %601  ;;  %v640_v57 = vpop.permute.xlu0 %639 }
 0x3e8   :  { %v645_v8 = vsel %vm200_vm6, %v640_v57, %v2362_v23 }
 0x3eb   :  { %v689_v59 = vpop.permute.xlu1 %688  ;;  %v623_v60 = vpop.permute.xlu0 %622 }
 0x3ec   :  { %v694_v1 = vsel %vm254_vm2, %v687_v51, %v689_v59  ;;  %v628_v19 = vsel %vm2890_vm5, %v623_v60, %v2409_v63 }
 0x3ef   :  { %v691_v61 = vpop.permute.xlu1 %690  ;;  %v606_v62 = vpop.permute.xlu0 %605 }
 0x3f0   :  { %v696_v21 = vsel %vm254_vm2, %v691_v61, %v2344_v17  ;;  %v695_v0 = vsel %vm254_vm2, %v689_v59, %v691_v61  ;;  %v611_v32 = vsel %vm164_vm8, %v606_v62, %v2428_v13  ;;  %v1121_v61 = vld [vmem:[#allocation2 + $0x48] sm:$0xff] }
 0x3f1   :  { %752 = vmatprep.subr.mxu0 %v695_v0  ;;  %1855 = vmatpush3.msra.mxu1 %v696_v21  ;;  %v1118_v21 = vld [vmem:[#allocation2 + $0x50] sm:$0xff]  ;;  %v1117_v0 = vld [vmem:[#allocation2 + $0x18] sm:$0xff] }
 0x3f2   :  { %753 = vmatpush1.msra.mxu0 %v694_v1  ;;  %1856 = vmatprep.subr.mxu1 %v2076_v5  ;;  %v1115_v1 = vld [vmem:[#allocation2] sm:$0xff] }
 0x3f3   :  { %v672_v10 = vpop.permute.xlu1 %671  ;;  %v587_v12 = vpop.permute.xlu0 %586 }
 0x3f4   :  { %v677_v17 = vsel %vm236_vm3, %v670_v42, %v672_v10 }
 0x3f7   :  { %v674_v15 = vpop.permute.xlu1 %673  ;;  %v570_v20 = vpop.permute.xlu0 %569 }
 0x3f8   :  { %v679_v24 = vsel %vm236_vm3, %v674_v15, %v2348_v18  ;;  %v678_v25 = vsel %vm236_vm3, %v672_v10, %v674_v15  ;;  %v1114_v10 = vld [vmem:[#allocation2 + $0x30] sm:$0xff] }
 0x3f9   :  { %754 = vmatprep.subr.mxu0 %v678_v25  ;;  %1857 = vmatpush3.msra.mxu1 %v679_v24 }
 0x3fa   :  { %755 = vmatpush1.msra.mxu0 %v677_v17  ;;  %1858 = vmatprep.subr.mxu1 %v2076_v5 }
 0x3fb   :  { %v655_v26 = vpop.permute.xlu1 %654  ;;  %1859 = vmatpush3.msra.mxu1 %v662_v9  ;;  %v1036_v27 = vpop.permute.xlu0 %1035 }
 0x3fc   :  { %v660_v18 = vsel %vm218_vm1, %v653_v47, %v655_v26  ;;  %v1039_v28 = vsel %vm2890_vm5, %v2416_v2, %v1036_v27  ;;  %1860 = vmatprep.subr.mxu1 %v2076_v5  ;;  %v661_v29 = vsel %vm218_vm1, %v655_v26, %v657_v52 }
 0x3fd   :  { %1045 = vst [vmem:[#allocation2 + $0x40] sm:$0xf] %v1039_v28  ;;  %756 = vmatprep.subr.mxu0 %v661_v29  ;;  %1861 = vmatpush3.msra.mxu1 %v645_v8 }
 0x3fe   :  { %757 = vmatpush1.msra.mxu0 %v660_v18  ;;  %1862 = vmatprep.subr.mxu1 %v2076_v5 }
 0x3ff   :  { %v638_v30 = vpop.permute.xlu1 %637  ;;  %1863 = vmatpush3.msra.mxu1 %v628_v19  ;;  %v1002_v23 = vpop.permute.xlu0 %1001 }
 0x400   :  { %v643_v2 = vsel %vm200_vm6, %v636_v48, %v638_v30  ;;  %v1005_v34 = vsel %vm2891_vm7, %v2379_v33, %v1002_v23  ;;  %1864 = vmatprep.subr.mxu1 %v2076_v5  ;;  %v644_v3 = vsel %vm200_vm6, %v638_v30, %v640_v57  ;;  %v1128_v57 = vld [vmem:[#allocation2 + $0x28] sm:$0xf] }
 0x401   :  { %1011 = vst [vmem:[#allocation2 + $0x68] sm:$0xf] %v1005_v34  ;;  %758 = vmatprep.subr.mxu0 %v644_v3  ;;  %1865 = vmatpush3.msra.mxu1 %v611_v32 }
 0x402   :  { %759 = vmatpush1.msra.mxu0 %v643_v2  ;;  %1866 = vmatprep.subr.mxu1 %v2076_v5 }
 0x403   :  { %v621_v63 = vpop.permute.xlu1 %620  ;;  %v984_v36 = vpop.permute.xlu0 %983 }
 0x404   :  { %v626_v38 = vsel %vm2890_vm5, %v619_v58, %v621_v63  ;;  %v987_v13 = vsel %vm2905_vm14, %v2463_v39, %v984_v36  ;;  %v627_v40 = vsel %vm2890_vm5, %v621_v63, %v623_v60  ;;  %v592_v39 = vsel %vm2891_vm7, %v2515_v44, %v587_v12  ;;  %vm2906_vm14 = vmmov %vm2903_vm12  ;;  %v1123_v60 = vld [vmem:[#allocation2 + $0x20] sm:$0xff] }
 0x405   :  { %993 = vst [vmem:[#allocation2 + $0x58] sm:$0xf0] %v987_v13  ;;  %760 = vmatprep.subr.mxu0 %v627_v40  ;;  %vm2907_vm5 = vmmov %vm2903_vm12 }
 0x406   :  { %761 = vmatpush1.msra.mxu0 %v626_v38 }
 0x407   :  { %v604_v33 = vpop.permute.xlu1 %603 }
 0x408   :  { %v609_v43 = vsel %vm164_vm8, %v602_v54, %v604_v33  ;;  %v610_v50 = vsel %vm164_vm8, %v604_v33, %v606_v62  ;;  %v575_v54 = vsel %vm2907_vm5, %v2517_v53, %v570_v20  ;;  %v1127_v53 = vld [vmem:[#allocation2 + $0x70] sm:$0xf]  ;;  %vm2908_vm5 = vcmask 1043456   ;;  %v1120_v62 = vld [vmem:[#allocation2 + $0x8] sm:$0xff] }
 0x409   :  { %762 = vmatprep.subr.mxu0 %v610_v50 }
 0x40a   :  { %763 = vmatpush1.msra.mxu0 %v609_v43 }
 0x40b   :  { %v589_v51 = vpop.permute.xlu1 %588 }
 0x40c   :  { %v594_v42 = vsel %vm2891_vm7, %v589_v51, %v2445_v31  ;;  %v593_v47 = vsel %vm2891_vm7, %v587_v12, %v589_v51  ;;  %v2567_v31 = vld [vmem:[#allocation10] sm:$0xff]  ;;  %vm2892_vm7 = vcmask 588800   ;;  %v1116_v15 = vld [vmem:[#allocation2 + $0x58] sm:$0xff] }
 0x40d   :  { %764 = vmatprep.subr.mxu0 %v593_v47  ;;  %1867 = vmatpush3.msra.mxu1 %v594_v42 }
 0x40e   :  { %765 = vmatpush1.msra.mxu0 %v592_v39  ;;  %1868 = vmatprep.subr.mxu1 %v2076_v5 }
 0x40f   :  { %v572_v48 = vpop.permute.xlu1 %571 }
 0x410   :  { %v577_v58 = vsel %vm2903_vm12, %v572_v48, %v2513_v6  ;;  %v576_v52 = vsel %vm2906_vm14, %v570_v20, %v572_v48  ;;  %vm2909_vm12 = vmmov %vm2908_vm5 }
 0x411   :  { %766 = vmatprep.subr.mxu0 %v576_v52  ;;  %1869 = vmatpush3.msra.mxu1 %v577_v58  ;;  %vm2910_vm14 = vmmov %vm2908_vm5 }
 0x412   :  { %767 = vmatpush1.msra.mxu0 %v575_v54  ;;  %1870 = vmatprep.subr.mxu1 %v2076_v5 }
 0x413   :  { %v1053_v44 = vpop.permute.xlu1 %1052  ;;  %768 = vmatprep.subr.mxu0 %v2472_v41  ;;  %1871 = vmatpush3.msra.mxu1 %v2456_v35  ;;  %v1126_v35 = vld [vmem:[#allocation2 + $0x60] sm:$0xf]  ;;  %v1125_v41 = vld [vmem:[#allocation2 + $0x38] sm:$0xff] }
 0x414   :  { %v1056_v6 = vsel %vm200_vm6, %v2422_v11, %v1053_v44  ;;  %769 = vmatpush1.msra.mxu0 %v2437_v22  ;;  %1875 = vmatprep.subr.mxu1 %v2076_v5  ;;  %v1124_v22 = vld [vmem:[#allocation2 + $0x10] sm:$0xff] }
 0x415   :  { %1062 = vst [vmem:[#allocation2 + $0x40] sm:$0xf0] %v1056_v6  ;;  %1800 = vmatmul.mubr.msk.f32.vlgmr.msra.gmra.mxu0 %vm2892_vm7, %v2567_v31  ;;  %1873 = vmatmul.mubr.msk.f32.vlgmr.msra.gmra.mxu1 %vm2892_vm7, %v2567_v31 }
 0x416   :  { %1802 = vmatprep.subr.msk.mxu0 %vm2908_vm5, %v1127_v53  ;;  %1876 = vmatpush3.msk.msra.mxu1 %vm2909_vm12, %v1128_v57  ;;  %vm2911_vm5 = vmmov 0   ;;  %vm2912_vm12 = vcmask 293888  }
 0x417   :  { %1803 = vmatpush1.msk.msra.mxu0 %vm2910_vm14, %v1126_v35  ;;  %1877 = vmatprep.subr.mxu1 %v2076_v5  ;;  %v1019_v11 = vpop.permute.xlu1 %1018  ;;  %vm2913_vm14 = vmmov %vm2912_vm12 }
 0x418   :  { %v1022_v59 = vsel %vm164_vm8, %v2381_v7, %v1019_v11  ;;  %1162 = vmatprep.subr.mxu0 %v1124_v22  ;;  %1878 = vmatpush3.msra.mxu1 %v1125_v41 }
 0x419   :  { %1028 = vst [vmem:[#allocation2 + $0x68] sm:$0xf0] %v1022_v59  ;;  %1163 = vmatpush1.msra.mxu0 %v1123_v60  ;;  %1879 = vmatprep.subr.mxu1 %v2076_v5 }
 0x41a   :  { %1164 = vmatprep.subr.mxu0 %v1121_v61  ;;  %1202 = vmatprep.mubr.f32.mxu0 %v2076_v5 }
 0x41b   :  { %1165 = vmatpush1.msra.mxu0 %v1120_v62  ;;  %1885 = vmatprep.mubr.msk.f32.mxu1 %vm2911_vm5, %v2076_v5 }
 0x41c   :  { %1166 = vmatprep.subr.mxu0 %v1118_v21  ;;  %v1122_v7 = vld [vmem:[#allocation2 + $0x40] sm:$0xff] }
 0x41d   :  { %1167 = vmatpush1.msra.mxu0 %v1117_v0  ;;  %1880 = vmatpush3.msra.mxu1 %v1122_v7 }
 0x41e   :  { %1168 = vmatprep.subr.mxu0 %v1115_v1  ;;  %1881 = vmatprep.subr.mxu1 %v2076_v5 }
 0x41f   :  { %1169 = vmatpush1.msra.mxu0 %v1114_v10 }
 0x420   :  { %1804 = vmatmul.mubr.msk.f32.vlgmr.msra.gmra.mxu0 %vm2912_vm12, %v2209_v14  ;;  %v1119_v12 = vld [vmem:[#allocation2 + $0x68] sm:$0xff] }
 0x421   :  { %1882 = vmatpush3.msra.mxu1 %v1119_v12  ;;  %1616 = vmatprep.mubr.f32.mxu0 %v2076_v5 }
 0x422   :  { %1883 = vmatprep.subr.mxu1 %v2076_v5 }
 0x423   :  { %1884 = vmatpush3.msra.mxu1 %v1116_v15 }
 0x424   :  { %1886 = vmatmul.mubr.msk.f32.vlgmr.msra.gmra.mxu1 %vm2913_vm14, %v2209_v14  ;;  %1888 = vmatprep.subr.mxu1 %v2076_v5 }
 0x425   :  { %1906 = vmatprep.mubr.msk.f32.mxu1 %vm2911_vm5, %v2076_v5  ;;  %vm2914_vm5 = vcmask 1043456  }
 0x426   :  { %vm2915_vm12 = vmmov %vm2914_vm5 }
 0x427   :  { %vm2916_vm14 = vmmov %vm2914_vm5 }
 0x428   :  { %vm2917_vm7 = vmmov %vm2914_vm5 }
 0x4d5   :  { %v2599_v20 = vpop.f32.mrf.mxu1  ;;  %v2601_v25 = vpop.f32.mrf.mxu0 }
 0x4d7   :  { %v1874_v24 = vpop.f32.mrf.mxu1  ;;  %v2603_v17 = vpop.f32.mrf.mxu0 }
 0x4e0   :  { %v1204_v9 = vpop.f32.mrf.mxu0 }
 0x4e1   :  { %v2606_v26 = vadd.f32 %v1204_v9, %v2228_v37 }
 0x4e2   :  { %v1206_v27 = vpop.f32.mrf.mxu0 }
 0x4e3   :  { %v1279_v8 = vmax.f32 %v2606_v26, 0.0  ;;  %v2610_v14 = vadd.f32 %v1206_v27, %v2228_v37 }
 0x4e4   :  { %v1275_v18 = vpop.f32.mrf.mxu1 }
 0x4e5   :  { %v1282_v28 = vsel %vm2236_vm15, %v1279_v8, 0.0  ;;  %v1280_v29 = vmax.f32 %v2610_v14, 0.0  ;;  %v2618_v19 = vadd.f32 %v1275_v18, %v2228_v37 }
 0x4e6   :  { %v1887_v30 = vpop.f32.mrf.mxu1  ;;  %v1285_v2 = vmul.f32 %v1282_v28, %v1282_v28 }
 0x4e7   :  { %v1283_v23 = vsel %vm2242_vm10, %v1280_v29, 0.0  ;;  %v1281_v32 = vmax.f32 %v2618_v19, 0.0 }
 0x4e8   :  { %v1286_v34 = vmul.f32 %v1283_v23, %v1283_v23  ;;  %v1288_v3 = vadd.f32 %v1283_v23, %v1282_v28 }
 0x4e9   :  { %v1284_v63 = vsel %vm2257_vm11, %v1281_v32, 0.0 }
 0x4ea   :  { %v1287_v36 = vmul.f32 %v1284_v63, %v1284_v63  ;;  %v1289_v38 = vadd.f32 %v1288_v3, %v1284_v63  ;;  %v1292_v37 = vadd.f32 %v1286_v34, %v1285_v2 }
 0x4ec   :  { %1290 = vadd.xlane.f32.xlu1 %v1289_v38  ;;  %v1293_v13 = vadd.f32 %v1292_v37, %v1287_v36 }
 0x4ee   :  { %1294 = vadd.xlane.f32.xlu0 %v1293_v13  ;;  %v2641_v13 = vld [vmem:[#allocation11] sm:$0xff] }
 0x575   :  { %v1291_v40 = vpop.xlane.xlu1 %1290 }
 0x576   :  { %v1296_v33 = vsel %vm2914_vm5, %v1291_v40, 0.0  ;;  %v1315_v43 = vrot.slane %v1291_v40, 4 }
 0x577   :  { %v1297_v50 = vrot.slane %v1296_v33, 4  ;;  %v1295_v51 = vpop.xlane.xlu0 %1294 }
 0x578   :  { %v1317_v42 = vsel %vm2915_vm12, %v1315_v43, 0.0  ;;  %v1303_v47 = vsel %vm2916_vm14, %v1295_v51, 0.0  ;;  %v1325_v39 = vrot.slane %v1295_v51, 4 }
 0x579   :  { %v1298_v48 = vadd.f32 %v1297_v50, %v1296_v33  ;;  %v1318_v58 = vrot.slane %v1317_v42, 4  ;;  %v1304_v52 = vrot.slane %v1303_v47, 4 }
 0x57a   :  { %v1327_v54 = vsel %vm2917_vm7, %v1325_v39, 0.0  ;;  %vm2918_vm7 = vcmask 416768  }
 0x57b   :  { %v1299_v44 = vrot.slane %v1298_v48, 2  ;;  %v1319_v6 = vadd.f32 %v1318_v58, %v1317_v42  ;;  %v1305_v53 = vadd.f32 %v1304_v52, %v1303_v47  ;;  %v1328_v57 = vrot.slane %v1327_v54, 4 }
 0x57d   :  { %v1300_v35 = vadd.f32 %v1299_v44, %v1298_v48  ;;  %v1320_v11 = vrot.slane %v1319_v6, 2  ;;  %v1306_v22 = vrot.slane %v1305_v53, 2  ;;  %v1329_v41 = vadd.f32 %v1328_v57, %v1327_v54 }
 0x57f   :  { %v1301_v59 = vrot.slane %v1300_v35, 1  ;;  %v1321_v60 = vadd.f32 %v1320_v11, %v1319_v6  ;;  %v1307_v61 = vadd.f32 %v1306_v22, %v1305_v53  ;;  %v1330_v62 = vrot.slane %v1329_v41, 2 }
 0x581   :  { %v1302_v21 = vadd.f32 %v1301_v59, %v1300_v35  ;;  %v1322_v0 = vrot.slane %v1321_v60, 1  ;;  %v1308_v7 = vrot.slane %v1307_v61, 1  ;;  %v1331_v1 = vadd.f32 %v1330_v62, %v1329_v41 }
 0x583   :  { %v1310_v10 = vmul.f32 0.0009765625, %v1302_v21  ;;  %v1323_v12 = vadd.f32 %v1322_v0, %v1321_v60  ;;  %v1309_v15 = vadd.f32 %v1308_v7, %v1307_v61  ;;  %v1332_v24 = vrot.slane %v1331_v1, 1 }
 0x585   :  { %v1311_v9 = vsel %vm2319_vm0, %v1310_v10, 0.0  ;;  %v1334_v27 = vmul.f32 0.0009765625, %v1323_v12  ;;  %v1312_v18 = vmul.f32 0.0009765625, %v1309_v15  ;;  %v1333_v28 = vadd.f32 %v1332_v24, %v1331_v1 }
 0x587   :  { %v1335_v30 = vsel %vm2323_vm4, %v1334_v27, %v1311_v9  ;;  %v1313_v23 = vsel %vm2319_vm0, %v1312_v18, 0.0  ;;  %v1336_v2 = vmul.f32 0.0009765625, %v1333_v28 }
 0x588   :  { %v1338_v34 = vmul.f32 %v1335_v30, %v1335_v30  ;;  %v1344_v33 = vsub.f32 %v1279_v8, %v1335_v30  ;;  %v1345_v43 = vsub.f32 %v1280_v29, %v1335_v30  ;;  %v1346_v47 = vsub.f32 %v1281_v32, %v1335_v30 }
 0x589   :  { %v1337_v3 = vsel %vm2323_vm4, %v1336_v2, %v1313_v23 }
 0x58a   :  { %v1339_v63 = vsub.f32 %v1337_v3, %v1338_v34 }
 0x58c   :  { %v1340_v36 = vmax.f32 %v1339_v63, 0.0 }
 0x58e   :  { %v1341_v38 = vadd.f32 1e-05, %v1340_v36 }
 0x590   :  { %1950 = vrsqrt.f32 %v1341_v38 }
 0x59d   :  { %v1951_v37 = vpop.eup %1950 }
 0x59e   :  { %v1343_v40 = vmul.f32 %v2641_v13, %v1951_v37 }
 0x5a0   :  { %1349 = vperm.xlu0 %1938, %v1343_v40  }
 0x61b   :  { %v1350_v50 = vpop.permute.xlu0 %1349 }
 0x61c   :  { %v1352_v51 = vmul.f32 %v1350_v50, %v1344_v33  ;;  %v1353_v42 = vmul.f32 %v1350_v50, %v1345_v43  ;;  %v1354_v48 = vmul.f32 %v1350_v50, %v1346_v47 }
 0x61e   :  { %v1355_v39 = vadd.f32 %v1352_v51, %v2340_v16  ;;  %v1356_v52 = vadd.f32 %v1353_v42, %v2340_v16  ;;  %v1357_v8 = vadd.f32 %v1354_v48, %v2340_v16  ;;  %v2085_v16 = vmov 3  }
 0x61f   :  { %1939 = vset.pattern.permute.xlu0 %v2085_v16 }
 0x620   :  { %v1358_v58 = vsel %vm2236_vm15, %v1355_v39, 0.0  ;;  %v1359_v26 = vsel %vm2242_vm10, %v1356_v52, 0.0  ;;  %v1360_v14 = vsel %vm2257_vm11, %v1357_v8, 0.0 }
 0x621   :  { %1364 = vrot.lane.b32.xlu1 %v1358_v58, %s2084_s15 }
 0x625   :  { %1366 = vrot.lane.b32.xlu1 %v1359_v26, %s2084_s15 }
 0x629   :  { %1368 = vrot.lane.b32.xlu1 %v1360_v14, %s2084_s15 }
 0x62d   :  { %1514 = vrot.lane.b32.xlu1 %v2268_v4, %s2071_s2 }
 0x631   :  { %1497 = vrot.lane.b32.xlu1 %v2268_v4, %s2073_s3 }
 0x635   :  { %1480 = vrot.lane.b32.xlu1 %v2268_v4, %s2072_s9 }
 0x639   :  { %1463 = vrot.lane.b32.xlu1 %v2268_v4, %s2075_s11 }
 0x63d   :  { %1446 = vrot.lane.b32.xlu1 %v2268_v4, %s2074_s10 }
 0x693   :  { %v1365_v29 = vpop.permute.xlu1 %1364 }
 0x694   :  { %1375 = vst.msk [vmem:[#allocation4] sm:$0xff] %vm551_vm13, %v1365_v29  ;;  %vm2924_vm13 = vcmask 1039360  }
 0x695   :  { %vm2925_vm5 = vmmov %vm2924_vm13 }
 0x696   :  { %vm2928_vm14 = vmmov %vm2925_vm5 }
 0x697   :  { %v1367_v19 = vpop.permute.xlu1 %1366 }
 0x698   :  { %v2674_v32 = vsel %vm102_vm9, %v1365_v29, %v1367_v19 }
 0x69b   :  { %v1369_v54 = vpop.permute.xlu1 %1368  ;;  %v2676_v44 = vld [vmem:[#allocation4] sm:$0xff] }
 0x69c   :  { %v1371_v6 = vsel %vm102_vm9, %v1367_v19, %v1369_v54  ;;  %1474 = vrot.lane.b32.xlu0 %v2676_v44, %s2072_s9  ;;  %1508 = vrot.lane.b32.xlu1 %v2676_v44, %s2071_s2 }
 0x69d   :  { %1377 = vst.msk [vmem:[#allocation4 + $0x10] sm:$0xff] %vm2918_vm7, %v1371_v6 }
 0x69f   :  { %v1515_v57 = vpop.permute.xlu1 %1514 }
 0x6a0   :  { %1457 = vrot.lane.b32.xlu0 %v2676_v44, %s2075_s11  ;;  %1491 = vrot.lane.b32.xlu1 %v2676_v44, %s2073_s3 }
 0x6a3   :  { %v1498_v35 = vpop.permute.xlu1 %1497 }
 0x6a4   :  { %1440 = vrot.lane.b32.xlu0 %v2676_v44, %s2074_s10  ;;  %1510 = vrot.lane.b32.xlu1 %v2674_v32, %s2071_s2  ;;  %v2692_v53 = vld [vmem:[#allocation4 + $0x10] sm:$0xff] }
 0x6a7   :  { %v1481_v11 = vpop.permute.xlu1 %1480 }
 0x6a8   :  { %1423 = vrot.lane.b32.xlu0 %v2676_v44, %s2078_s13  ;;  %1512 = vrot.lane.b32.xlu1 %v2692_v53, %s2071_s2 }
 0x6ab   :  { %v1464_v22 = vpop.permute.xlu1 %1463 }
 0x6ac   :  { %1406 = vrot.lane.b32.xlu0 %v2676_v44, %s2077_s12  ;;  %1493 = vrot.lane.b32.xlu1 %v2674_v32, %s2073_s3 }
 0x6af   :  { %v1447_v41 = vpop.permute.xlu1 %1446 }
 0x6b0   :  { %1389 = vrot.lane.b32.xlu0 %v2676_v44, %s2079_s14  ;;  %1478 = vrot.lane.b32.xlu1 %v2692_v53, %s2072_s9 }
 0x6b4   :  { %1495 = vrot.lane.b32.xlu0 %v2692_v53, %s2073_s3  ;;  %1461 = vrot.lane.b32.xlu1 %v2692_v53, %s2075_s11 }
 0x6b8   :  { %1476 = vrot.lane.b32.xlu0 %v2674_v32, %s2072_s9  ;;  %1444 = vrot.lane.b32.xlu1 %v2692_v53, %s2074_s10 }
 0x6bc   :  { %1459 = vrot.lane.b32.xlu0 %v2674_v32, %s2075_s11  ;;  %1427 = vrot.lane.b32.xlu1 %v2692_v53, %s2078_s13 }
 0x6c0   :  { %1442 = vrot.lane.b32.xlu0 %v2674_v32, %s2074_s10  ;;  %1410 = vrot.lane.b32.xlu1 %v2692_v53, %s2077_s12 }
 0x6c4   :  { %1425 = vrot.lane.b32.xlu0 %v2674_v32, %s2078_s13  ;;  %1393 = vrot.lane.b32.xlu1 %v2692_v53, %s2079_s14 }
 0x6c8   :  { %1408 = vrot.lane.b32.xlu0 %v2674_v32, %s2077_s12  ;;  %1429 = vrot.lane.b32.xlu1 %v2268_v4, %s2078_s13 }
 0x6cc   :  { %1391 = vrot.lane.b32.xlu0 %v2674_v32, %s2079_s14  ;;  %1395 = vrot.lane.b32.xlu1 %v2268_v4, %s2079_s14 }
 0x6d0   :  { %1412 = vrot.lane.b32.xlu0 %v2268_v4, %s2077_s12 }
 0x6d4   :  { %731 = vperm.xlu0 %1939, %v2641_v13  }
 0x70e   :  { %v1475_v59 = vpop.permute.xlu0 %1474  ;;  %v1509_v60 = vpop.permute.xlu1 %1508 }
 0x712   :  { %v1458_v61 = vpop.permute.xlu0 %1457  ;;  %v1492_v62 = vpop.permute.xlu1 %1491 }
 0x716   :  { %v1441_v21 = vpop.permute.xlu0 %1440  ;;  %v1511_v0 = vpop.permute.xlu1 %1510 }
 0x717   :  { %v1516_v4 = vsel %vm254_vm2, %v1509_v60, %v1511_v0 }
 0x71a   :  { %v1424_v7 = vpop.permute.xlu0 %1423  ;;  %v1513_v1 = vpop.permute.xlu1 %1512 }
 0x71b   :  { %v1518_v10 = vsel %vm254_vm2, %v1513_v1, %v1515_v57  ;;  %v1517_v12 = vsel %vm254_vm2, %v1511_v0, %v1513_v1  ;;  %vm2919_vm2 = vcmask 891904  }
 0x71c   :  { %1566 = vmatprep.subr.mxu0 %v1517_v12  ;;  %1889 = vmatpush3.msra.mxu1 %v1518_v10 }
 0x71d   :  { %1567 = vmatpush1.msra.mxu0 %v1516_v4  ;;  %1890 = vmatprep.subr.mxu1 %v2076_v5  ;;  %v2086_v4 = vmov 4  }
 0x71e   :  { %v1407_v15 = vpop.permute.xlu0 %1406  ;;  %v1494_v24 = vpop.permute.xlu1 %1493  ;;  %1940 = vset.pattern.permute.xlu1 %v2086_v4  ;;  %1941 = vset.pattern.permute.xlu0 %v2086_v4 }
 0x71f   :  { %v1499_v2 = vsel %vm236_vm3, %v1492_v62, %v1494_v24 }
 0x722   :  { %v1390_v9 = vpop.permute.xlu0 %1389  ;;  %v1479_v27 = vpop.permute.xlu1 %1478 }
 0x723   :  { %v1484_v34 = vsel %vm218_vm1, %v1479_v27, %v1481_v11 }
 0x726   :  { %v1496_v18 = vpop.permute.xlu0 %1495  ;;  %v1462_v28 = vpop.permute.xlu1 %1461 }
 0x727   :  { %v1501_v30 = vsel %vm236_vm3, %v1496_v18, %v1498_v35  ;;  %v1500_v23 = vsel %vm236_vm3, %v1494_v24, %v1496_v18  ;;  %v1467_v36 = vsel %vm200_vm6, %v1462_v28, %v1464_v22 }
 0x728   :  { %1568 = vmatprep.subr.mxu0 %v1500_v23  ;;  %1891 = vmatpush3.msra.mxu1 %v1501_v30 }
 0x729   :  { %1569 = vmatpush1.msra.mxu0 %v1499_v2  ;;  %1892 = vmatprep.subr.mxu1 %v2076_v5 }
 0x72a   :  { %v1477_v3 = vpop.permute.xlu0 %1476  ;;  %1893 = vmatpush3.msra.mxu1 %v1484_v34  ;;  %v1445_v63 = vpop.permute.xlu1 %1444 }
 0x72b   :  { %v1482_v38 = vsel %vm218_vm1, %v1475_v59, %v1477_v3  ;;  %1894 = vmatprep.subr.mxu1 %v2076_v5  ;;  %v1483_v37 = vsel %vm218_vm1, %v1477_v3, %v1479_v27  ;;  %v1450_v40 = vsel %vm2919_vm2, %v1445_v63, %v1447_v41  ;;  %vm2920_vm1 = vmmov %vm2919_vm2  ;;  %vm2930_vm2 = vcmask 1043456  }
 0x72c   :  { %1570 = vmatprep.subr.mxu0 %v1483_v37  ;;  %1895 = vmatpush3.msra.mxu1 %v1467_v36  ;;  %vm2921_vm3 = vmmov %vm2920_vm1 }
 0x72d   :  { %1571 = vmatpush1.msra.mxu0 %v1482_v38  ;;  %1896 = vmatprep.subr.mxu1 %v2076_v5 }
 0x72e   :  { %v1460_v33 = vpop.permute.xlu0 %1459  ;;  %1897 = vmatpush3.msra.mxu1 %v1450_v40  ;;  %v1428_v43 = vpop.permute.xlu1 %1427 }
 0x72f   :  { %v1465_v50 = vsel %vm200_vm6, %v1458_v61, %v1460_v33  ;;  %v1466_v51 = vsel %vm200_vm6, %v1460_v33, %v1462_v28  ;;  %1898 = vmatprep.subr.mxu1 %v2076_v5  ;;  %vm2922_vm6 = vcmask 1031168  }
 0x730   :  { %1572 = vmatprep.subr.mxu0 %v1466_v51  ;;  %vm2923_vm9 = vmmov %vm2922_vm6 }
 0x731   :  { %1573 = vmatpush1.msra.mxu0 %v1465_v50  ;;  %vm2926_vm12 = vmmov %vm2922_vm6 }
 0x732   :  { %v1443_v42 = vpop.permute.xlu0 %1442  ;;  %v1411_v47 = vpop.permute.xlu1 %1410 }
 0x733   :  { %v1448_v39 = vsel %vm2920_vm1, %v1441_v21, %v1443_v42  ;;  %v1449_v48 = vsel %vm2921_vm3, %v1443_v42, %v1445_v63  ;;  %vm2931_vm1 = vmmov %vm2930_vm2 }
 0x734   :  { %1574 = vmatprep.subr.mxu0 %v1449_v48  ;;  %vm2932_vm3 = vmmov %vm2931_vm1 }
 0x735   :  { %1575 = vmatpush1.msra.mxu0 %v1448_v39 }
 0x736   :  { %v1426_v58 = vpop.permute.xlu0 %1425  ;;  %v1394_v52 = vpop.permute.xlu1 %1393 }
 0x737   :  { %v1431_v26 = vsel %vm164_vm8, %v1424_v7, %v1426_v58  ;;  %v1432_v8 = vsel %vm164_vm8, %v1426_v58, %v1428_v43 }
 0x738   :  { %1576 = vmatprep.subr.mxu0 %v1432_v8 }
 0x739   :  { %1577 = vmatpush1.msra.mxu0 %v1431_v26 }
 0x73a   :  { %v1409_v14 = vpop.permute.xlu0 %1408  ;;  %v1430_v16 = vpop.permute.xlu1 %1429 }
 0x73b   :  { %v1414_v29 = vsel %vm2922_vm6, %v1407_v15, %v1409_v14  ;;  %v1433_v19 = vsel %vm164_vm8, %v1428_v43, %v1430_v16  ;;  %v1415_v54 = vsel %vm2923_vm9, %v1409_v14, %v1411_v47  ;;  %vm2927_vm8 = vcmask 588800   ;;  %vm2933_vm6 = vmmov %vm2931_vm1 }
 0x73c   :  { %1578 = vmatprep.subr.mxu0 %v1415_v54  ;;  %1899 = vmatpush3.msra.mxu1 %v1433_v19  ;;  %vm2929_vm7 = vmmov %vm2927_vm8 }
 0x73d   :  { %1579 = vmatpush1.msra.mxu0 %v1414_v29  ;;  %1900 = vmatprep.subr.mxu1 %v2076_v5  ;;  %vm2937_vm9 = vmmov %vm2931_vm1 }
 0x73e   :  { %v1392_v6 = vpop.permute.xlu0 %1391  ;;  %v1396_v11 = vpop.permute.xlu1 %1395 }
 0x73f   :  { %v1397_v57 = vsel %vm2924_vm13, %v1390_v9, %v1392_v6  ;;  %v1398_v35 = vsel %vm2925_vm5, %v1392_v6, %v1394_v52  ;;  %v1399_v59 = vsel %vm2928_vm14, %v1394_v52, %v1396_v11 }
 0x740   :  { %1580 = vmatprep.subr.mxu0 %v1398_v35 }
 0x741   :  { %1581 = vmatpush1.msra.mxu0 %v1397_v57 }
 0x742   :  { %v1413_v22 = vpop.permute.xlu0 %1412  ;;  %1582 = vmatprep.subr.mxu0 %v2674_v32 }
 0x743   :  { %v1416_v41 = vsel %vm2926_vm12, %v1411_v47, %v1413_v22  ;;  %1583 = vmatpush1.msra.mxu0 %v2676_v44 }
 0x744   :  { %1807 = vmatmul.mubr.msk.f32.vlgmr.msra.gmra.mxu0 %vm2927_vm8, %v2567_v31  ;;  %1901 = vmatpush3.msra.mxu1 %v1416_v41 }
 0x745   :  { %1902 = vmatprep.subr.mxu1 %v2076_v5 }
 0x746   :  { %1903 = vmatpush3.msra.mxu1 %v1399_v59 }
 0x747   :  { %1904 = vmatprep.subr.mxu1 %v2076_v5 }
 0x748   :  { %1905 = vmatpush3.msra.mxu1 %v2692_v53 }
 0x749   :  { %1907 = vmatmul.mubr.msk.f32.vlgmr.msra.gmra.mxu1 %vm2929_vm7, %v2567_v31 }
 0x74f   :  { %v2776_v32 = vpop.permute.xlu0 %731 }
 0x750   :  { %v2780_v44 = vadd.f32 %v2601_v25, %v2776_v32  ;;  %v2784_v60 = vadd.f32 %v2603_v17, %v2776_v32  ;;  %v2788_v61 = vadd.f32 %v2599_v20, %v2776_v32 }
 0x752   :  { %v879_v5 = vmax.f32 %v2780_v44, 0.0  ;;  %v880_v53 = vmax.f32 %v2784_v60, 0.0  ;;  %v881_v31 = vmax.f32 %v2788_v61, 0.0 }
 0x754   :  { %v882_v25 = vsel %vm2236_vm15, %v879_v5, 0.0  ;;  %v883_v17 = vsel %vm2242_vm10, %v880_v53, 0.0  ;;  %v884_v0 = vsel %vm2257_vm11, %v881_v31, 0.0 }
 0x755   :  { %v888_v62 = vadd.f32 %v883_v17, %v882_v25  ;;  %v885_v21 = vmul.f32 %v882_v25, %v882_v25  ;;  %v886_v20 = vmul.f32 %v883_v17, %v883_v17  ;;  %v887_v10 = vmul.f32 %v884_v0, %v884_v0 }
 0x757   :  { %v889_v7 = vadd.f32 %v888_v62, %v884_v0  ;;  %v892_v1 = vadd.f32 %v886_v20, %v885_v21 }
 0x759   :  { %890 = vadd.xlane.f32.xlu1 %v889_v7  ;;  %v893_v12 = vadd.f32 %v892_v1, %v887_v10 }
 0x75d   :  { %894 = vadd.xlane.f32.xlu1 %v893_v12 }
 0x7e2   :  { %v891_v15 = vpop.xlane.xlu1 %890 }
 0x7e3   :  { %v896_v24 = vsel %vm2930_vm2, %v891_v15, 0.0  ;;  %v915_v9 = vrot.slane %v891_v15, 4 }
 0x7e4   :  { %v897_v27 = vrot.slane %v896_v24, 4 }
 0x7e5   :  { %v917_v18 = vsel %vm2931_vm1, %v915_v9, 0.0 }
 0x7e6   :  { %v898_v28 = vadd.f32 %v897_v27, %v896_v24  ;;  %v918_v30 = vrot.slane %v917_v18, 4  ;;  %v895_v23 = vpop.xlane.xlu1 %894 }
 0x7e7   :  { %v903_v2 = vsel %vm2932_vm3, %v895_v23, 0.0  ;;  %v925_v34 = vrot.slane %v895_v23, 4 }
 0x7e8   :  { %v899_v3 = vrot.slane %v898_v28, 2  ;;  %v919_v63 = vadd.f32 %v918_v30, %v917_v18  ;;  %v904_v36 = vrot.slane %v903_v2, 4 }
 0x7e9   :  { %v927_v38 = vsel %vm2933_vm6, %v925_v34, 0.0 }
 0x7ea   :  { %v900_v37 = vadd.f32 %v899_v3, %v898_v28  ;;  %v920_v40 = vrot.slane %v919_v63, 2  ;;  %v905_v33 = vadd.f32 %v904_v36, %v903_v2  ;;  %v928_v43 = vrot.slane %v927_v38, 4 }
 0x7ec   :  { %v901_v50 = vrot.slane %v900_v37, 1  ;;  %v921_v51 = vadd.f32 %v920_v40, %v919_v63  ;;  %v906_v42 = vrot.slane %v905_v33, 2  ;;  %v929_v47 = vadd.f32 %v928_v43, %v927_v38 }
 0x7ee   :  { %v902_v39 = vadd.f32 %v901_v50, %v900_v37  ;;  %v922_v48 = vrot.slane %v921_v51, 1  ;;  %v907_v58 = vadd.f32 %v906_v42, %v905_v33  ;;  %v930_v52 = vrot.slane %v929_v47, 2 }
 0x7f0   :  { %v910_v26 = vmul.f32 0.0009765625, %v902_v39  ;;  %v923_v8 = vadd.f32 %v922_v48, %v921_v51  ;;  %v908_v14 = vrot.slane %v907_v58, 1  ;;  %v931_v16 = vadd.f32 %v930_v52, %v929_v47 }
 0x7f2   :  { %v911_v29 = vsel %vm2319_vm0, %v910_v26, 0.0  ;;  %v934_v19 = vmul.f32 0.0009765625, %v923_v8  ;;  %v909_v54 = vadd.f32 %v908_v14, %v907_v58  ;;  %v932_v6 = vrot.slane %v931_v16, 1 }
 0x7f4   :  { %v935_v57 = vsel %vm2323_vm4, %v934_v19, %v911_v29  ;;  %v912_v35 = vmul.f32 0.0009765625, %v909_v54  ;;  %v933_v11 = vadd.f32 %v932_v6, %v931_v16 }
 0x7f5   :  { %v938_v59 = vmul.f32 %v935_v57, %v935_v57  ;;  %v944_v37 = vsub.f32 %v879_v5, %v935_v57  ;;  %v945_v40 = vsub.f32 %v880_v53, %v935_v57  ;;  %v946_v55 = vsub.f32 %v881_v31, %v935_v57 }
 0x7f6   :  { %v913_v22 = vsel %vm2319_vm0, %v912_v35, 0.0  ;;  %v936_v41 = vmul.f32 0.0009765625, %v933_v11 }
 0x7f8   :  { %v937_v25 = vsel %vm2323_vm4, %v936_v41, %v913_v22 }
 0x7f9   :  { %v939_v17 = vsub.f32 %v937_v25, %v938_v59 }
 0x7fb   :  { %v940_v62 = vmax.f32 %v939_v17, 0.0 }
 0x7fd   :  { %v941_v21 = vadd.f32 1e-05, %v940_v62 }
 0x7ff   :  { %1952 = vrsqrt.f32 %v941_v21 }
 0x804   :  { %v1618_v20 = vpop.f32.mrf.mxu0 }
 0x805   :  { %v2818_v0 = vadd.f32 %v1618_v20, %v2776_v32 }
 0x806   :  { %v1620_v7 = vpop.f32.mrf.mxu0 }
 0x807   :  { %v1693_v1 = vmax.f32 %v2818_v0, 0.0  ;;  %v2822_v10 = vadd.f32 %v1620_v7, %v2776_v32 }
 0x809   :  { %v1694_v12 = vmax.f32 %v2822_v10, 0.0  ;;  %v1689_v4 = vpop.f32.mrf.mxu1  ;;  %v1696_v15 = vsel %vm2236_vm15, %v1693_v1, 0.0  ;;  %vm2935_vm15 = vmmov %vm2931_vm1 }
 0x80a   :  { %v2830_v24 = vadd.f32 %v1689_v4, %v2776_v32  ;;  %v1699_v2 = vmul.f32 %v1696_v15, %v1696_v15 }
 0x80b   :  { %v1697_v9 = vsel %vm2242_vm10, %v1694_v12, 0.0  ;;  %v1908_v27 = vpop.f32.mrf.mxu1  ;;  %vm2934_vm10 = vmmov %vm2931_vm1 }
 0x80c   :  { %v1953_v18 = vpop.eup %1952  ;;  %v1700_v28 = vmul.f32 %v1697_v9, %v1697_v9  ;;  %v1702_v30 = vadd.f32 %v1697_v9, %v1696_v15  ;;  %v1695_v23 = vmax.f32 %v2830_v24, 0.0 }
 0x80d   :  { %v943_v34 = vmul.f32 %v2641_v13, %v1953_v18 }
 0x80e   :  { %v1698_v46 = vsel %vm2257_vm11, %v1695_v23, 0.0  ;;  %v1706_v63 = vadd.f32 %v1700_v28, %v1699_v2  ;;  %vm2936_vm11 = vmmov %vm2931_vm1 }
 0x80f   :  { %v1701_v32 = vmul.f32 %v1698_v46, %v1698_v46  ;;  %949 = vperm.xlu1 %1940, %v943_v34   ;;  %v1703_v3 = vadd.f32 %v1702_v30, %v1698_v46 }
 0x811   :  { %1704 = vadd.xlane.f32.xlu0 %v1703_v3  ;;  %v1707_v36 = vadd.f32 %v1706_v63, %v1701_v32 }
 0x813   :  { %1942 = vset.pattern.permute.xlu1 %v2087_v49 }
 0x814   :  { %956 = vperm.xlu1 %1942, %v2641_v13  }
 0x815   :  { %1708 = vadd.xlane.f32.xlu0 %v1707_v36 }
 0x88a   :  { %v950_v38 = vpop.permute.xlu1 %949 }
 0x88b   :  { %v952_v33 = vmul.f32 %v950_v38, %v944_v37  ;;  %v953_v43 = vmul.f32 %v950_v38, %v945_v40  ;;  %v954_v50 = vmul.f32 %v950_v38, %v946_v55 }
 0x88f   :  { %v2849_v51 = vpop.permute.xlu1 %956 }
 0x890   :  { %v959_v42 = vadd.f32 %v2849_v51, %v952_v33  ;;  %v960_v47 = vadd.f32 %v2849_v51, %v953_v43  ;;  %v961_v39 = vadd.f32 %v2849_v51, %v954_v50 }
 0x892   :  { %962 = vst [vmem:[#allocation13] sm:$0xff] %v959_v42  ;;  %963 = vst [vmem:[#allocation13 + $0x8] sm:$0xff] %v960_v47 }
 0x893   :  { %964 = vst [vmem:[#allocation13 + $0x10] sm:$0xff] %v961_v39 }
 0x89a   :  { %v1705_v44 = vpop.xlane.xlu0 %1704 }
 0x89b   :  { %v1710_v60 = vsel %vm2934_vm10, %v1705_v44, 0.0  ;;  %v1729_v5 = vrot.slane %v1705_v44, 4 }
 0x89c   :  { %v1711_v61 = vrot.slane %v1710_v60, 4 }
 0x89d   :  { %v1731_v53 = vsel %vm2935_vm15, %v1729_v5, 0.0 }
 0x89e   :  { %v1712_v31 = vadd.f32 %v1711_v61, %v1710_v60  ;;  %v1732_v48 = vrot.slane %v1731_v53, 4  ;;  %v1709_v58 = vpop.xlane.xlu0 %1708 }
 0x89f   :  { %v1717_v52 = vsel %vm2936_vm11, %v1709_v58, 0.0  ;;  %v1739_v26 = vrot.slane %v1709_v58, 4 }
 0x8a0   :  { %v1713_v8 = vrot.slane %v1712_v31, 2  ;;  %v1733_v14 = vadd.f32 %v1732_v48, %v1731_v53  ;;  %v1718_v16 = vrot.slane %v1717_v52, 4 }
 0x8a1   :  { %v1741_v29 = vsel %vm2937_vm9, %v1739_v26, 0.0 }
 0x8a2   :  { %v1714_v19 = vadd.f32 %v1713_v8, %v1712_v31  ;;  %v1734_v54 = vrot.slane %v1733_v14, 2  ;;  %v1719_v6 = vadd.f32 %v1718_v16, %v1717_v52  ;;  %v1742_v57 = vrot.slane %v1741_v29, 4 }
 0x8a4   :  { %v1715_v35 = vrot.slane %v1714_v19, 1  ;;  %v1735_v11 = vadd.f32 %v1734_v54, %v1733_v14  ;;  %v1720_v22 = vrot.slane %v1719_v6, 2  ;;  %v1743_v41 = vadd.f32 %v1742_v57, %v1741_v29 }
 0x8a6   :  { %v1716_v59 = vadd.f32 %v1715_v35, %v1714_v19  ;;  %v1736_v25 = vrot.slane %v1735_v11, 1  ;;  %v1721_v17 = vadd.f32 %v1720_v22, %v1719_v6  ;;  %v1744_v62 = vrot.slane %v1743_v41, 2 }
 0x8a8   :  { %v1724_v21 = vmul.f32 0.0009765625, %v1716_v59  ;;  %v1737_v20 = vadd.f32 %v1736_v25, %v1735_v11  ;;  %v1722_v7 = vrot.slane %v1721_v17, 1  ;;  %v1745_v4 = vadd.f32 %v1744_v62, %v1743_v41 }
 0x8aa   :  { %v1725_v15 = vsel %vm2319_vm0, %v1724_v21, 0.0  ;;  %v1748_v9 = vmul.f32 0.0009765625, %v1737_v20  ;;  %v1723_v27 = vadd.f32 %v1722_v7, %v1721_v17  ;;  %v1746_v18 = vrot.slane %v1745_v4, 1 }
 0x8ac   :  { %v1749_v28 = vsel %vm2323_vm4, %v1748_v9, %v1725_v15  ;;  %v1726_v30 = vmul.f32 0.0009765625, %v1723_v27  ;;  %v1747_v2 = vadd.f32 %v1746_v18, %v1745_v4 }
 0x8ad   :  { %v1752_v32 = vmul.f32 %v1749_v28, %v1749_v28  ;;  %v1758_v40 = vsub.f32 %v1693_v1, %v1749_v28  ;;  %v1759_v45 = vsub.f32 %v1694_v12, %v1749_v28  ;;  %v1760_v55 = vsub.f32 %v1695_v23, %v1749_v28 }
 0x8ae   :  { %v1727_v34 = vsel %vm2319_vm0, %v1726_v30, 0.0  ;;  %v1750_v46 = vmul.f32 0.0009765625, %v1747_v2 }
 0x8b0   :  { %v1751_v3 = vsel %vm2323_vm4, %v1750_v46, %v1727_v34 }
 0x8b1   :  { %v1753_v63 = vsub.f32 %v1751_v3, %v1752_v32 }
 0x8b3   :  { %v1754_v49 = vmax.f32 %v1753_v63, 0.0 }
 0x8b5   :  { %v1755_v36 = vadd.f32 1e-05, %v1754_v49 }
 0x8b7   :  { %1954 = vrsqrt.f32 %v1755_v36 }
 0x8c4   :  { %v1955_v38 = vpop.eup %1954 }
 0x8c5   :  { %v1757_v37 = vmul.f32 %v2641_v13, %v1955_v38 }
 0x8c7   :  { %1763 = vperm.xlu0 %1941, %v1757_v37  }
 0x942   :  { %v1764_v33 = vpop.permute.xlu0 %1763 }
 0x943   :  { %v1766_v56 = vmul.f32 %v1764_v33, %v1758_v40  ;;  %v1767_v43 = vmul.f32 %v1764_v33, %v1759_v45  ;;  %v1768_v50 = vmul.f32 %v1764_v33, %v1760_v55 }
 0x945   :  { %v1769_v42 = vadd.f32 %v1766_v56, %v2849_v51  ;;  %v1770_v13 = vadd.f32 %v1767_v43, %v2849_v51  ;;  %v1771_v47 = vadd.f32 %v1768_v50, %v2849_v51 }
 0x947   :  { %1773 = vst [vmem:[#allocation13 + $0x18] sm:$0xff] %v1769_v42  ;;  %1774 = vst [vmem:[#allocation13 + $0x20] sm:$0xff] %v1770_v13 }
 0x948   :  { %1775 = vst [vmem:[#allocation13 + $0x28] sm:$0xff] %v1771_v47 }
 0x949   :  { %2048 = shalt.err (!%p2045_p10)
}
 0x94a   :  { %s2089_s19 = smov 384   ;;  %s2090_s20 = smov 24  }
 0x94b   :  { %1787 = dma.vmem_to_hbm [thread:$0]  %s1782_s17, 768, %s2883_s4, [#allocation7], %s2089_s19, %s2089_s19, %s2090_s20  }
 0x94c   :  { %2063 = dma.done.wait [#allocation7], 768  }
 0x94d   :  { %2064 = vsyncadd [#allocation7], 4294966528 }
 0x94e   :  { %1791 = vsyncpa [#allocation6], 1 }
 0x94f   :  { %1792 = vsyncpa [#allocation9], 1 }
 0x950   :  { %1793 = vsyncpa [#allocation12], 1 }
 0x951   :  { %1794 = vsyncpa [#allocation7], 1 }

</bundles_post_ra>
